<compile_context>
chip_gen: v6e
topology: v6e:2x2x1
jax: 0.10.0
libtpu: 0.0.40
codegen_flags: <defaults>
</compile_context>

<pallas_src>
import functools

import jax
import jax.numpy as jnp
from jax import lax
from jax.experimental import pallas as pl
from jax.experimental.pallas import tpu as pltpu


# ----------------------------------------------------------------------------- kernel

def _lee_kernel(ntile,
                p5_ref, p3_ref, p1_ref,
                w5_ref, b5_ref, w3_ref, b3_ref, w1_ref, b1_ref,
                m1_ref, m2_ref,
                wc1_ref, bc1_ref, wc2_ref, bc2_ref, wc3_ref, bc3_ref,
                wc4_ref, bc4_ref, wc5_ref, bc5_ref, wc6_ref, bc6_ref,
                wc7_ref, bc7_ref, wc8_ref, bc8_ref,
                out_ref):
    relu = lambda v: jnp.maximum(v, 0.0)
    dot = lambda a, b: jnp.dot(a, b, preferred_element_type=jnp.float32)

    def lrn(a, mask_ref):
        # PyTorch LocalResponseNorm with k=1, beta=0.75; alpha/size folded into mask.
        t = 1.0 + dot(mask_ref[...], a * a)               # (C, ntile)
        inv = lax.rsqrt(t) * lax.rsqrt(jnp.sqrt(t))       # t^-0.75 on EUP, no pow/divide
        return a * inv

    def max_over_positions(y, npos):
        # y is (width, npos*ntile), positions packed at 128-aligned lane offsets.
        acc = y[:, 0:ntile]
        for pos in range(1, npos):
            acc = jnp.maximum(acc, y[:, pos * ntile:(pos + 1) * ntile])
        return acc

    # --- branch 1: conv_5x5 (pad 0) on a 5x5 patch -> single spatial position.
    x5 = dot(w5_ref[...], p5_ref[...]) + b5_ref[...]                       # (width, ntile)

    # --- branch 2: conv_3x3 (pad 1) + MaxPool(3,3)/3: one fused matmul over the 9
    # pool positions, max over positions, bias added once (max(y+b) == max(y)+b).
    y3 = dot(w3_ref[...], p3_ref[...])                                     # (width, 9*ntile)
    x3 = max_over_positions(y3, 9) + b3_ref[...]

    # --- branch 3: conv_1x1 (pad 2) + MaxPool(5,5)/5: 9 real pixels in the window;
    # padded positions produce exactly the bias (pre-bias value 0) -> max with 0.
    y1 = dot(w1_ref[...], p1_ref[...])                                     # (width, 9*ntile)
    x1 = jnp.maximum(max_over_positions(y1, 9), 0.0) + b1_ref[...]

    # sublane (axis 0) concat of three 8-sublane-aligned tiles -> cheap.
    x = jnp.concatenate([x5, x3, x1], axis=0)                              # (3*width, ntile)

    x = relu(lrn(x, m1_ref))
    x = dot(wc1_ref[...], x) + bc1_ref[...]                                # conv1 (1x1)
    x = relu(lrn(x, m2_ref))

    x_res = relu(dot(wc2_ref[...], x) + bc2_ref[...])                      # conv2
    x_res = dot(wc3_ref[...], x_res) + bc3_ref[...]                        # conv3
    x = relu(x + x_res)

    x_res = relu(dot(wc4_ref[...], x) + bc4_ref[...])                      # conv4
    x_res = dot(wc5_ref[...], x_res) + bc5_ref[...]                        # conv5
    x = relu(x + x_res)

    x = relu(dot(wc6_ref[...], x) + bc6_ref[...])                          # conv6
    # nn.Dropout(p=0.5): inference semantics -> identity.
    # TODO(synk): training-mode dropout (random mask + 1/(1-p) scaling) not reproduced.
    x = relu(dot(wc7_ref[...], x) + bc7_ref[...])                          # conv7
    out_ref[...] = dot(wc8_ref[...], x) + bc8_ref[...]                     # conv8 -> (n_classes, ntile)


# ----------------------------------------------------------------------------- params

def init_params(key, in_channels, n_classes, width):
    """Deterministic re-implementation of LeeEtAl.weight_init: N(0, 0.01) weights, bias = 1."""
    ks = jax.random.split(key, 11)
    w = lambda k, shape: 0.01 * jax.random.normal(k, shape, jnp.float32)
    ones = lambda n: jnp.ones((n,), jnp.float32)
    params = {
        "w5": w(ks[0], (width, in_channels, 5, 5)), "b5": ones(width),
        "w3": w(ks[1], (width, in_channels, 3, 3)), "b3": ones(width),
        "w1": w(ks[2], (width, in_channels, 1, 1)), "b1": ones(width),
        "wc1": w(ks[3], (width, 3 * width, 1, 1)), "bc1": ones(width),
    }
    for idx in range(2, 8):                                   # conv2 .. conv7
        params[f"wc{idx}"] = w(ks[idx + 2], (width, width, 1, 1))
        params[f"bc{idx}"] = ones(width)
    params["wc8"] = w(ks[10], (n_classes, width, 1, 1))
    params["bc8"] = ones(n_classes)
    return params


def _lrn_mask(nch, size, alpha=1e-4):
    """(C_out, C_src) window mask, matching PyTorch's [c - size//2, c + (size-1)//2]
    window, pre-scaled by alpha/size."""
    c_out = jnp.arange(nch)[:, None]
    c_src = jnp.arange(nch)[None, :]
    win = ((c_src >= c_out - size // 2) & (c_src <= c_out + (size - 1) // 2))
    return win.astype(jnp.float32) * (alpha / size)


def _round_up(a, b):
    return ((a + b - 1) // b) * b


# ----------------------------------------------------------------------------- forward

def lee_et_al_forward(params, x, width, n_classes, block_n=512):
    N, C, H, W_sp = x.shape
    assert H == 5 and W_sp == 5, "this kernel instantiates the module for 5x5 patches"

    # batch tile: multiple of 128 lanes, no bigger than needed for small batches.
    block_n = max(128, min(block_n, _round_up(N, 128)))
    padded_n = _round_up(N, block_n)
    num_blocks = padded_n // block_n

    xpad = jnp.pad(x, ((0, padded_n - N), (0, 0), (0, 0), (0, 0)))
    Np = padded_n

    # --- patches, transposed layout (features on sublanes, batch on lanes) ---
    # branch 1: valid 5x5 conv -> one position.
    p5 = xpad.reshape(Np, C * 25).T                                        # (C*25, Np)

    # branch 2: conv_3x3 (pad 1) patches at the 9 positions covered by MaxPool(3,3)/3,
    # packed pos-major within each batch block along the lane axis.
    xp = jnp.pad(xpad, ((0, 0), (0, 0), (1, 1), (1, 1)))
    p3 = jnp.stack([xp[:, :, i:i + 3, j:j + 3].reshape(Np, C * 9)
                    for i in range(3) for j in range(3)], axis=0)          # (9, Np, C*9)
    p3 = (p3.reshape(9, num_blocks, block_n, C * 9)
            .transpose(3, 1, 0, 2)
            .reshape(C * 9, num_blocks * 9 * block_n))                     # (C*9, nb*9*bn)

    # branch 3: the 9 real pixels inside the MaxPool(5,5)/5 window (padded positions
    # are handled in-kernel via max with 0), same pos-major packing.
    p1 = jnp.stack([xpad[:, :, i, j] for i in range(3) for j in range(3)], axis=0)  # (9, Np, C)
    p1 = (p1.reshape(9, num_blocks, block_n, C)
            .transpose(3, 1, 0, 2)
            .reshape(C, num_blocks * 9 * block_n))                         # (C, nb*9*bn)

    m = lambda wk: wk.reshape(wk.shape[0], -1)            # (O, I, kh, kw) -> (O, I*kh*kw)
    col = lambda bk: bk.reshape(-1, 1)                    # (O,) -> (O, 1)

    mask1 = _lrn_mask(3 * width, 3 * width)               # lrn1
    mask2 = _lrn_mask(width, width)                       # lrn2

    args = (p5, p3, p1,
            m(params["w5"]), col(params["b5"]),
            m(params["w3"]), col(params["b3"]),
            m(params["w1"]), col(params["b1"]),
            mask1, mask2,
            m(params["wc1"]), col(params["bc1"]),
            m(params["wc2"]), col(params["bc2"]),
            m(params["wc3"]), col(params["bc3"]),
            m(params["wc4"]), col(params["bc4"]),
            m(params["wc5"]), col(params["bc5"]),
            m(params["wc6"]), col(params["bc6"]),
            m(params["wc7"]), col(params["bc7"]),
            m(params["wc8"]), col(params["bc8"]))

    def _const_spec(arr):  # weight/bias/mask: full block, same every grid step -> resident
        return pl.BlockSpec(arr.shape, lambda i: (0, 0))

    in_specs = [
        pl.BlockSpec((C * 25, block_n), lambda i: (0, i)),       # p5
        pl.BlockSpec((C * 9, 9 * block_n), lambda i: (0, i)),    # p3
        pl.BlockSpec((C, 9 * block_n), lambda i: (0, i)),        # p1
    ] + [_const_spec(a) for a in args[3:]]

    out_specs = pl.BlockSpec((n_classes, block_n), lambda i: (0, i))

    kernel = functools.partial(_lee_kernel, block_n)
    out = pl.pallas_call(
        kernel,
        out_shape=jax.ShapeDtypeStruct((n_classes, padded_n), jnp.float32),
        grid=(num_blocks,),
        in_specs=in_specs,
        out_specs=out_specs,
        compiler_params=pltpu.CompilerParams(
            dimension_semantics=("parallel",),
            vmem_limit_bytes=32 * 1024 * 1024),
    )(*args)

    return out[:, :N].T                                    # (N, n_classes)


# ----------------------------------------------------------------------------- reference

def _reference_forward(params, x, width, n_classes):
    """Plain-JAX reference of the same module instantiation (for correctness check)."""
    N, C, H, W_sp = x.shape
    relu = lambda v: jnp.maximum(v, 0.0)

    def lrn(a, size, alpha=1e-4, beta=0.75, k=1.0):
        nch = a.shape[1]
        c_out = jnp.arange(nch)[:, None]
        c_src = jnp.arange(nch)[None, :]
        win = ((c_src >= c_out - size // 2) &
               (c_src <= c_out + (size - 1) // 2)).astype(jnp.float32)
        s = (a * a) @ win.T
        return a / jnp.power(k + (alpha / size) * s, beta)

    m = lambda wk: wk.reshape(wk.shape[0], -1)
    x5 = x.reshape(N, -1) @ m(params["w5"]).T + params["b5"]
    xp = jnp.pad(x, ((0, 0), (0, 0), (1, 1), (1, 1)))
    y3 = [xp[:, :, i:i + 3, j:j + 3].reshape(N, -1) @ m(params["w3"]).T + params["b3"]
          for i in range(3) for j in range(3)]
    x3 = functools.reduce(jnp.maximum, y3)
    y1 = [x[:, :, i, j] @ m(params["w1"]).T for i in range(3) for j in range(3)]
    x1 = jnp.maximum(functools.reduce(jnp.maximum, y1), 0.0) + params["b1"]
    h = jnp.concatenate([x5, x3, x1], axis=1)
    h = relu(lrn(h, 3 * width))
    h = h @ m(params["wc1"]).T + params["bc1"]
    h = relu(lrn(h, width))
    r = relu(h @ m(params["wc2"]).T + params["bc2"])
    r = r @ m(params["wc3"]).T + params["bc3"]
    h = relu(h + r)
    r = relu(h @ m(params["wc4"]).T + params["bc4"])
    r = r @ m(params["wc5"]).T + params["bc5"]
    h = relu(h + r)
    h = relu(h @ m(params["wc6"]).T + params["bc6"])
    h = relu(h @ m(params["wc7"]).T + params["bc7"])
    return h @ m(params["wc8"]).T + params["bc8"]


# ----------------------------------------------------------------------------- main

if __name__ == "__main__":
    N, C, H, W = 2, 4, 5, 5          # batch, in_channels, 5x5 patch (required by the concat)
    width, n_classes = 8, 10

    key = jax.random.PRNGKey(0)
    kx, kp = jax.random.split(key)
    x = jax.random.normal(kx, (N, C, H, W), jnp.float32)
    params = init_params(kp, C, n_classes, width)

    out = lee_et_al_forward(params, x, width, n_classes)
    out = jax.block_until_ready(out)

    assert out.shape == (N, n_classes), out.shape
    assert bool(jnp.all(jnp.isfinite(out)))

    ref = _reference_forward(params, x, width, n_classes)
    assert bool(jnp.allclose(out, ref, rtol=2e-3, atol=2e-3)), (out, ref)

    print("KERNEL_OK")
</pallas_src>

<mosaic_0001>
module attributes {stable_mosaic.version = 11 : i64} {
  func.func @_lee_kernel(%arg0: i32, %arg1: memref<100x128xf32, #tpu.memory_space<vmem>>, %arg2: memref<36x1152xf32, #tpu.memory_space<vmem>>, %arg3: memref<4x1152xf32, #tpu.memory_space<vmem>>, %arg4: memref<8x100xf32, #tpu.memory_space<vmem>>, %arg5: memref<8x1xf32, #tpu.memory_space<vmem>>, %arg6: memref<8x36xf32, #tpu.memory_space<vmem>>, %arg7: memref<8x1xf32, #tpu.memory_space<vmem>>, %arg8: memref<8x4xf32, #tpu.memory_space<vmem>>, %arg9: memref<8x1xf32, #tpu.memory_space<vmem>>, %arg10: memref<24x24xf32, #tpu.memory_space<vmem>>, %arg11: memref<8x8xf32, #tpu.memory_space<vmem>>, %arg12: memref<8x24xf32, #tpu.memory_space<vmem>>, %arg13: memref<8x1xf32, #tpu.memory_space<vmem>>, %arg14: memref<8x8xf32, #tpu.memory_space<vmem>>, %arg15: memref<8x1xf32, #tpu.memory_space<vmem>>, %arg16: memref<8x8xf32, #tpu.memory_space<vmem>>, %arg17: memref<8x1xf32, #tpu.memory_space<vmem>>, %arg18: memref<8x8xf32, #tpu.memory_space<vmem>>, %arg19: memref<8x1xf32, #tpu.memory_space<vmem>>, %arg20: memref<8x8xf32, #tpu.memory_space<vmem>>, %arg21: memref<8x1xf32, #tpu.memory_space<vmem>>, %arg22: memref<8x8xf32, #tpu.memory_space<vmem>>, %arg23: memref<8x1xf32, #tpu.memory_space<vmem>>, %arg24: memref<8x8xf32, #tpu.memory_space<vmem>>, %arg25: memref<8x1xf32, #tpu.memory_space<vmem>>, %arg26: memref<10x8xf32, #tpu.memory_space<vmem>>, %arg27: memref<10x1xf32, #tpu.memory_space<vmem>>, %arg28: memref<10x128xf32, #tpu.memory_space<vmem>>) attributes {dimension_semantics = [#tpu.dimension_semantics<parallel>], iteration_bounds = array<i64: 1>, scalar_prefetch = 0 : i64, scratch_operands = 0 : i64, tpu.core_type = #tpu.core_type<tc>, window_params = [{transform_indices = @transform_0, window_bounds = array<i64: 100, 128>}, {transform_indices = @transform_1, window_bounds = array<i64: 36, 1152>}, {transform_indices = @transform_2, window_bounds = array<i64: 4, 1152>}, {pipeline_mode = #tpu.pipeline_mode<synchronous>, transform_indices = @transform_3, window_bounds = array<i64: 8, 100>}, {pipeline_mode = #tpu.pipeline_mode<synchronous>, transform_indices = @transform_4, window_bounds = array<i64: 8, 1>}, {pipeline_mode = #tpu.pipeline_mode<synchronous>, transform_indices = @transform_5, window_bounds = array<i64: 8, 36>}, {pipeline_mode = #tpu.pipeline_mode<synchronous>, transform_indices = @transform_6, window_bounds = array<i64: 8, 1>}, {pipeline_mode = #tpu.pipeline_mode<synchronous>, transform_indices = @transform_7, window_bounds = array<i64: 8, 4>}, {pipeline_mode = #tpu.pipeline_mode<synchronous>, transform_indices = @transform_8, window_bounds = array<i64: 8, 1>}, {pipeline_mode = #tpu.pipeline_mode<synchronous>, transform_indices = @transform_9, window_bounds = array<i64: 24, 24>}, {pipeline_mode = #tpu.pipeline_mode<synchronous>, transform_indices = @transform_10, window_bounds = array<i64: 8, 8>}, {pipeline_mode = #tpu.pipeline_mode<synchronous>, transform_indices = @transform_11, window_bounds = array<i64: 8, 24>}, {pipeline_mode = #tpu.pipeline_mode<synchronous>, transform_indices = @transform_12, window_bounds = array<i64: 8, 1>}, {pipeline_mode = #tpu.pipeline_mode<synchronous>, transform_indices = @transform_13, window_bounds = array<i64: 8, 8>}, {pipeline_mode = #tpu.pipeline_mode<synchronous>, transform_indices = @transform_14, window_bounds = array<i64: 8, 1>}, {pipeline_mode = #tpu.pipeline_mode<synchronous>, transform_indices = @transform_15, window_bounds = array<i64: 8, 8>}, {pipeline_mode = #tpu.pipeline_mode<synchronous>, transform_indices = @transform_16, window_bounds = array<i64: 8, 1>}, {pipeline_mode = #tpu.pipeline_mode<synchronous>, transform_indices = @transform_17, window_bounds = array<i64: 8, 8>}, {pipeline_mode = #tpu.pipeline_mode<synchronous>, transform_indices = @transform_18, window_bounds = array<i64: 8, 1>}, {pipeline_mode = #tpu.pipeline_mode<synchronous>, transform_indices = @transform_19, window_bounds = array<i64: 8, 8>}, {pipeline_mode = #tpu.pipeline_mode<synchronous>, transform_indices = @transform_20, window_bounds = array<i64: 8, 1>}, {pipeline_mode = #tpu.pipeline_mode<synchronous>, transform_indices = @transform_21, window_bounds = array<i64: 8, 8>}, {pipeline_mode = #tpu.pipeline_mode<synchronous>, transform_indices = @transform_22, window_bounds = array<i64: 8, 1>}, {pipeline_mode = #tpu.pipeline_mode<synchronous>, transform_indices = @transform_23, window_bounds = array<i64: 8, 8>}, {pipeline_mode = #tpu.pipeline_mode<synchronous>, transform_indices = @transform_24, window_bounds = array<i64: 8, 1>}, {pipeline_mode = #tpu.pipeline_mode<synchronous>, transform_indices = @transform_25, window_bounds = array<i64: 10, 8>}, {pipeline_mode = #tpu.pipeline_mode<synchronous>, transform_indices = @transform_26, window_bounds = array<i64: 10, 1>}, {transform_indices = @transform_27, window_bounds = array<i64: 10, 128>}]} {
    %c0 = arith.constant 0 : index
    %c0_0 = arith.constant 0 : index
    %0 = vector.load %arg4[%c0, %c0_0] : memref<8x100xf32, #tpu.memory_space<vmem>>, vector<8x100xf32>
    %c0_1 = arith.constant 0 : index
    %c0_2 = arith.constant 0 : index
    %1 = vector.load %arg1[%c0_1, %c0_2] : memref<100x128xf32, #tpu.memory_space<vmem>>, vector<100x128xf32>
    %cst = arith.constant dense<0.000000e+00> : vector<8x128xf32>
    %2 = tpu.matmul %0, %1, %cst {dimension_numbers = #tpu.dot_dimension_numbers<[1], [0], [0], [1], [0, 0, 1, 1], [], []>} : vector<8x100xf32>, vector<100x128xf32>, vector<8x128xf32> -> vector<8x128xf32>
    %c0_3 = arith.constant 0 : index
    %c0_4 = arith.constant 0 : index
    %3 = vector.load %arg5[%c0_3, %c0_4] : memref<8x1xf32, #tpu.memory_space<vmem>>, vector<8x1xf32>
    %4 = vector.broadcast %3 : vector<8x1xf32> to vector<8x128xf32>
    %5 = arith.addf %2, %4 : vector<8x128xf32>
    %c0_5 = arith.constant 0 : index
    %c0_6 = arith.constant 0 : index
    %6 = vector.load %arg6[%c0_5, %c0_6] : memref<8x36xf32, #tpu.memory_space<vmem>>, vector<8x36xf32>
    %c0_7 = arith.constant 0 : index
    %c0_8 = arith.constant 0 : index
    %7 = vector.load %arg2[%c0_7, %c0_8] : memref<36x1152xf32, #tpu.memory_space<vmem>>, vector<36x1152xf32>
    %cst_9 = arith.constant dense<0.000000e+00> : vector<8x1152xf32>
    %8 = tpu.matmul %6, %7, %cst_9 {dimension_numbers = #tpu.dot_dimension_numbers<[1], [0], [0], [1], [0, 0, 1, 1], [], []>} : vector<8x36xf32>, vector<36x1152xf32>, vector<8x1152xf32> -> vector<8x1152xf32>
    %9 = vector.extract_strided_slice %8 {offsets = [0, 0], sizes = [8, 128], strides = [1, 1]} : vector<8x1152xf32> to vector<8x128xf32>
    %10 = vector.extract_strided_slice %8 {offsets = [0, 128], sizes = [8, 128], strides = [1, 1]} : vector<8x1152xf32> to vector<8x128xf32>
    %11 = arith.maximumf %9, %10 : vector<8x128xf32>
    %12 = vector.extract_strided_slice %8 {offsets = [0, 256], sizes = [8, 128], strides = [1, 1]} : vector<8x1152xf32> to vector<8x128xf32>
    %13 = arith.maximumf %11, %12 : vector<8x128xf32>
    %14 = vector.extract_strided_slice %8 {offsets = [0, 384], sizes = [8, 128], strides = [1, 1]} : vector<8x1152xf32> to vector<8x128xf32>
    %15 = arith.maximumf %13, %14 : vector<8x128xf32>
    %16 = vector.extract_strided_slice %8 {offsets = [0, 512], sizes = [8, 128], strides = [1, 1]} : vector<8x1152xf32> to vector<8x128xf32>
    %17 = arith.maximumf %15, %16 : vector<8x128xf32>
    %18 = vector.extract_strided_slice %8 {offsets = [0, 640], sizes = [8, 128], strides = [1, 1]} : vector<8x1152xf32> to vector<8x128xf32>
    %19 = arith.maximumf %17, %18 : vector<8x128xf32>
    %20 = vector.extract_strided_slice %8 {offsets = [0, 768], sizes = [8, 128], strides = [1, 1]} : vector<8x1152xf32> to vector<8x128xf32>
    %21 = arith.maximumf %19, %20 : vector<8x128xf32>
    %22 = vector.extract_strided_slice %8 {offsets = [0, 896], sizes = [8, 128], strides = [1, 1]} : vector<8x1152xf32> to vector<8x128xf32>
    %23 = arith.maximumf %21, %22 : vector<8x128xf32>
    %24 = vector.extract_strided_slice %8 {offsets = [0, 1024], sizes = [8, 128], strides = [1, 1]} : vector<8x1152xf32> to vector<8x128xf32>
    %25 = arith.maximumf %23, %24 : vector<8x128xf32>
    %c0_10 = arith.constant 0 : index
    %c0_11 = arith.constant 0 : index
    %26 = vector.load %arg7[%c0_10, %c0_11] : memref<8x1xf32, #tpu.memory_space<vmem>>, vector<8x1xf32>
    %27 = vector.broadcast %26 : vector<8x1xf32> to vector<8x128xf32>
    %28 = arith.addf %25, %27 : vector<8x128xf32>
    %c0_12 = arith.constant 0 : index
    %c0_13 = arith.constant 0 : index
    %29 = vector.load %arg8[%c0_12, %c0_13] : memref<8x4xf32, #tpu.memory_space<vmem>>, vector<8x4xf32>
    %c0_14 = arith.constant 0 : index
    %c0_15 = arith.constant 0 : index
    %30 = vector.load %arg3[%c0_14, %c0_15] : memref<4x1152xf32, #tpu.memory_space<vmem>>, vector<4x1152xf32>
    %cst_16 = arith.constant dense<0.000000e+00> : vector<8x1152xf32>
    %31 = tpu.matmul %29, %30, %cst_16 {dimension_numbers = #tpu.dot_dimension_numbers<[1], [0], [0], [1], [0, 0, 1, 1], [], []>} : vector<8x4xf32>, vector<4x1152xf32>, vector<8x1152xf32> -> vector<8x1152xf32>
    %32 = vector.extract_strided_slice %31 {offsets = [0, 0], sizes = [8, 128], strides = [1, 1]} : vector<8x1152xf32> to vector<8x128xf32>
    %33 = vector.extract_strided_slice %31 {offsets = [0, 128], sizes = [8, 128], strides = [1, 1]} : vector<8x1152xf32> to vector<8x128xf32>
    %34 = arith.maximumf %32, %33 : vector<8x128xf32>
    %35 = vector.extract_strided_slice %31 {offsets = [0, 256], sizes = [8, 128], strides = [1, 1]} : vector<8x1152xf32> to vector<8x128xf32>
    %36 = arith.maximumf %34, %35 : vector<8x128xf32>
    %37 = vector.extract_strided_slice %31 {offsets = [0, 384], sizes = [8, 128], strides = [1, 1]} : vector<8x1152xf32> to vector<8x128xf32>
    %38 = arith.maximumf %36, %37 : vector<8x128xf32>
    %39 = vector.extract_strided_slice %31 {offsets = [0, 512], sizes = [8, 128], strides = [1, 1]} : vector<8x1152xf32> to vector<8x128xf32>
    %40 = arith.maximumf %38, %39 : vector<8x128xf32>
    %41 = vector.extract_strided_slice %31 {offsets = [0, 640], sizes = [8, 128], strides = [1, 1]} : vector<8x1152xf32> to vector<8x128xf32>
    %42 = arith.maximumf %40, %41 : vector<8x128xf32>
    %43 = vector.extract_strided_slice %31 {offsets = [0, 768], sizes = [8, 128], strides = [1, 1]} : vector<8x1152xf32> to vector<8x128xf32>
    %44 = arith.maximumf %42, %43 : vector<8x128xf32>
    %45 = vector.extract_strided_slice %31 {offsets = [0, 896], sizes = [8, 128], strides = [1, 1]} : vector<8x1152xf32> to vector<8x128xf32>
    %46 = arith.maximumf %44, %45 : vector<8x128xf32>
    %47 = vector.extract_strided_slice %31 {offsets = [0, 1024], sizes = [8, 128], strides = [1, 1]} : vector<8x1152xf32> to vector<8x128xf32>
    %48 = arith.maximumf %46, %47 : vector<8x128xf32>
    %cst_17 = arith.constant 0.000000e+00 : f32
    %49 = vector.broadcast %cst_17 : f32 to vector<8x128xf32>
    %50 = arith.maximumf %48, %49 : vector<8x128xf32>
    %c0_18 = arith.constant 0 : index
    %c0_19 = arith.constant 0 : index
    %51 = vector.load %arg9[%c0_18, %c0_19] : memref<8x1xf32, #tpu.memory_space<vmem>>, vector<8x1xf32>
    %52 = vector.broadcast %51 : vector<8x1xf32> to vector<8x128xf32>
    %53 = arith.addf %50, %52 : vector<8x128xf32>
    %54 = tpu.concatenate %5, %28, %53 in 0 : vector<8x128xf32>, vector<8x128xf32>, vector<8x128xf32> -> vector<24x128xf32>
    %c0_20 = arith.constant 0 : index
    %c0_21 = arith.constant 0 : index
    %55 = vector.load %arg10[%c0_20, %c0_21] : memref<24x24xf32, #tpu.memory_space<vmem>>, vector<24x24xf32>
    %56 = arith.mulf %54, %54 : vector<24x128xf32>
    %cst_22 = arith.constant dense<0.000000e+00> : vector<24x128xf32>
    %57 = tpu.matmul %55, %56, %cst_22 {dimension_numbers = #tpu.dot_dimension_numbers<[1], [0], [0], [1], [0, 0, 1, 1], [], []>} : vector<24x24xf32>, vector<24x128xf32>, vector<24x128xf32> -> vector<24x128xf32>
    %cst_23 = arith.constant 1.000000e+00 : f32
    %58 = vector.broadcast %cst_23 : f32 to vector<24x128xf32>
    %59 = arith.addf %58, %57 : vector<24x128xf32>
    %60 = math.rsqrt %59 : vector<24x128xf32>
    %61 = math.sqrt %59 : vector<24x128xf32>
    %62 = math.rsqrt %61 : vector<24x128xf32>
    %63 = arith.mulf %60, %62 : vector<24x128xf32>
    %64 = arith.mulf %54, %63 : vector<24x128xf32>
    %cst_24 = arith.constant 0.000000e+00 : f32
    %65 = vector.broadcast %cst_24 : f32 to vector<24x128xf32>
    %66 = arith.maximumf %64, %65 : vector<24x128xf32>
    %c0_25 = arith.constant 0 : index
    %c0_26 = arith.constant 0 : index
    %67 = vector.load %arg12[%c0_25, %c0_26] : memref<8x24xf32, #tpu.memory_space<vmem>>, vector<8x24xf32>
    %cst_27 = arith.constant dense<0.000000e+00> : vector<8x128xf32>
    %68 = tpu.matmul %67, %66, %cst_27 {dimension_numbers = #tpu.dot_dimension_numbers<[1], [0], [0], [1], [0, 0, 1, 1], [], []>} : vector<8x24xf32>, vector<24x128xf32>, vector<8x128xf32> -> vector<8x128xf32>
    %c0_28 = arith.constant 0 : index
    %c0_29 = arith.constant 0 : index
    %69 = vector.load %arg13[%c0_28, %c0_29] : memref<8x1xf32, #tpu.memory_space<vmem>>, vector<8x1xf32>
    %70 = vector.broadcast %69 : vector<8x1xf32> to vector<8x128xf32>
    %71 = arith.addf %68, %70 : vector<8x128xf32>
    %c0_30 = arith.constant 0 : index
    %c0_31 = arith.constant 0 : index
    %72 = vector.load %arg11[%c0_30, %c0_31] : memref<8x8xf32, #tpu.memory_space<vmem>>, vector<8x8xf32>
    %73 = arith.mulf %71, %71 : vector<8x128xf32>
    %cst_32 = arith.constant dense<0.000000e+00> : vector<8x128xf32>
    %74 = tpu.matmul %72, %73, %cst_32 {dimension_numbers = #tpu.dot_dimension_numbers<[1], [0], [0], [1], [0, 0, 1, 1], [], []>} : vector<8x8xf32>, vector<8x128xf32>, vector<8x128xf32> -> vector<8x128xf32>
    %cst_33 = arith.constant 1.000000e+00 : f32
    %75 = vector.broadcast %cst_33 : f32 to vector<8x128xf32>
    %76 = arith.addf %75, %74 : vector<8x128xf32>
    %77 = math.rsqrt %76 : vector<8x128xf32>
    %78 = math.sqrt %76 : vector<8x128xf32>
    %79 = math.rsqrt %78 : vector<8x128xf32>
    %80 = arith.mulf %77, %79 : vector<8x128xf32>
    %81 = arith.mulf %71, %80 : vector<8x128xf32>
    %cst_34 = arith.constant 0.000000e+00 : f32
    %82 = vector.broadcast %cst_34 : f32 to vector<8x128xf32>
    %83 = arith.maximumf %81, %82 : vector<8x128xf32>
    %c0_35 = arith.constant 0 : index
    %c0_36 = arith.constant 0 : index
    %84 = vector.load %arg14[%c0_35, %c0_36] : memref<8x8xf32, #tpu.memory_space<vmem>>, vector<8x8xf32>
    %cst_37 = arith.constant dense<0.000000e+00> : vector<8x128xf32>
    %85 = tpu.matmul %84, %83, %cst_37 {dimension_numbers = #tpu.dot_dimension_numbers<[1], [0], [0], [1], [0, 0, 1, 1], [], []>} : vector<8x8xf32>, vector<8x128xf32>, vector<8x128xf32> -> vector<8x128xf32>
    %c0_38 = arith.constant 0 : index
    %c0_39 = arith.constant 0 : index
    %86 = vector.load %arg15[%c0_38, %c0_39] : memref<8x1xf32, #tpu.memory_space<vmem>>, vector<8x1xf32>
    %87 = vector.broadcast %86 : vector<8x1xf32> to vector<8x128xf32>
    %88 = arith.addf %85, %87 : vector<8x128xf32>
    %cst_40 = arith.constant 0.000000e+00 : f32
    %89 = vector.broadcast %cst_40 : f32 to vector<8x128xf32>
    %90 = arith.maximumf %88, %89 : vector<8x128xf32>
    %c0_41 = arith.constant 0 : index
    %c0_42 = arith.constant 0 : index
    %91 = vector.load %arg16[%c0_41, %c0_42] : memref<8x8xf32, #tpu.memory_space<vmem>>, vector<8x8xf32>
    %cst_43 = arith.constant dense<0.000000e+00> : vector<8x128xf32>
    %92 = tpu.matmul %91, %90, %cst_43 {dimension_numbers = #tpu.dot_dimension_numbers<[1], [0], [0], [1], [0, 0, 1, 1], [], []>} : vector<8x8xf32>, vector<8x128xf32>, vector<8x128xf32> -> vector<8x128xf32>
    %c0_44 = arith.constant 0 : index
    %c0_45 = arith.constant 0 : index
    %93 = vector.load %arg17[%c0_44, %c0_45] : memref<8x1xf32, #tpu.memory_space<vmem>>, vector<8x1xf32>
    %94 = vector.broadcast %93 : vector<8x1xf32> to vector<8x128xf32>
    %95 = arith.addf %92, %94 : vector<8x128xf32>
    %96 = arith.addf %83, %95 : vector<8x128xf32>
    %cst_46 = arith.constant 0.000000e+00 : f32
    %97 = vector.broadcast %cst_46 : f32 to vector<8x128xf32>
    %98 = arith.maximumf %96, %97 : vector<8x128xf32>
    %c0_47 = arith.constant 0 : index
    %c0_48 = arith.constant 0 : index
    %99 = vector.load %arg18[%c0_47, %c0_48] : memref<8x8xf32, #tpu.memory_space<vmem>>, vector<8x8xf32>
    %cst_49 = arith.constant dense<0.000000e+00> : vector<8x128xf32>
    %100 = tpu.matmul %99, %98, %cst_49 {dimension_numbers = #tpu.dot_dimension_numbers<[1], [0], [0], [1], [0, 0, 1, 1], [], []>} : vector<8x8xf32>, vector<8x128xf32>, vector<8x128xf32> -> vector<8x128xf32>
    %c0_50 = arith.constant 0 : index
    %c0_51 = arith.constant 0 : index
    %101 = vector.load %arg19[%c0_50, %c0_51] : memref<8x1xf32, #tpu.memory_space<vmem>>, vector<8x1xf32>
    %102 = vector.broadcast %101 : vector<8x1xf32> to vector<8x128xf32>
    %103 = arith.addf %100, %102 : vector<8x128xf32>
    %cst_52 = arith.constant 0.000000e+00 : f32
    %104 = vector.broadcast %cst_52 : f32 to vector<8x128xf32>
    %105 = arith.maximumf %103, %104 : vector<8x128xf32>
    %c0_53 = arith.constant 0 : index
    %c0_54 = arith.constant 0 : index
    %106 = vector.load %arg20[%c0_53, %c0_54] : memref<8x8xf32, #tpu.memory_space<vmem>>, vector<8x8xf32>
    %cst_55 = arith.constant dense<0.000000e+00> : vector<8x128xf32>
    %107 = tpu.matmul %106, %105, %cst_55 {dimension_numbers = #tpu.dot_dimension_numbers<[1], [0], [0], [1], [0, 0, 1, 1], [], []>} : vector<8x8xf32>, vector<8x128xf32>, vector<8x128xf32> -> vector<8x128xf32>
    %c0_56 = arith.constant 0 : index
    %c0_57 = arith.constant 0 : index
    %108 = vector.load %arg21[%c0_56, %c0_57] : memref<8x1xf32, #tpu.memory_space<vmem>>, vector<8x1xf32>
    %109 = vector.broadcast %108 : vector<8x1xf32> to vector<8x128xf32>
    %110 = arith.addf %107, %109 : vector<8x128xf32>
    %111 = arith.addf %98, %110 : vector<8x128xf32>
    %cst_58 = arith.constant 0.000000e+00 : f32
    %112 = vector.broadcast %cst_58 : f32 to vector<8x128xf32>
    %113 = arith.maximumf %111, %112 : vector<8x128xf32>
    %c0_59 = arith.constant 0 : index
    %c0_60 = arith.constant 0 : index
    %114 = vector.load %arg22[%c0_59, %c0_60] : memref<8x8xf32, #tpu.memory_space<vmem>>, vector<8x8xf32>
    %cst_61 = arith.constant dense<0.000000e+00> : vector<8x128xf32>
    %115 = tpu.matmul %114, %113, %cst_61 {dimension_numbers = #tpu.dot_dimension_numbers<[1], [0], [0], [1], [0, 0, 1, 1], [], []>} : vector<8x8xf32>, vector<8x128xf32>, vector<8x128xf32> -> vector<8x128xf32>
    %c0_62 = arith.constant 0 : index
    %c0_63 = arith.constant 0 : index
    %116 = vector.load %arg23[%c0_62, %c0_63] : memref<8x1xf32, #tpu.memory_space<vmem>>, vector<8x1xf32>
    %117 = vector.broadcast %116 : vector<8x1xf32> to vector<8x128xf32>
    %118 = arith.addf %115, %117 : vector<8x128xf32>
    %cst_64 = arith.constant 0.000000e+00 : f32
    %119 = vector.broadcast %cst_64 : f32 to vector<8x128xf32>
    %120 = arith.maximumf %118, %119 : vector<8x128xf32>
    %c0_65 = arith.constant 0 : index
    %c0_66 = arith.constant 0 : index
    %121 = vector.load %arg24[%c0_65, %c0_66] : memref<8x8xf32, #tpu.memory_space<vmem>>, vector<8x8xf32>
    %cst_67 = arith.constant dense<0.000000e+00> : vector<8x128xf32>
    %122 = tpu.matmul %121, %120, %cst_67 {dimension_numbers = #tpu.dot_dimension_numbers<[1], [0], [0], [1], [0, 0, 1, 1], [], []>} : vector<8x8xf32>, vector<8x128xf32>, vector<8x128xf32> -> vector<8x128xf32>
    %c0_68 = arith.constant 0 : index
    %c0_69 = arith.constant 0 : index
    %123 = vector.load %arg25[%c0_68, %c0_69] : memref<8x1xf32, #tpu.memory_space<vmem>>, vector<8x1xf32>
    %124 = vector.broadcast %123 : vector<8x1xf32> to vector<8x128xf32>
    %125 = arith.addf %122, %124 : vector<8x128xf32>
    %cst_70 = arith.constant 0.000000e+00 : f32
    %126 = vector.broadcast %cst_70 : f32 to vector<8x128xf32>
    %127 = arith.maximumf %125, %126 : vector<8x128xf32>
    %c0_71 = arith.constant 0 : index
    %c0_72 = arith.constant 0 : index
    %128 = vector.load %arg26[%c0_71, %c0_72] : memref<10x8xf32, #tpu.memory_space<vmem>>, vector<10x8xf32>
    %cst_73 = arith.constant dense<0.000000e+00> : vector<10x128xf32>
    %129 = tpu.matmul %128, %127, %cst_73 {dimension_numbers = #tpu.dot_dimension_numbers<[1], [0], [0], [1], [0, 0, 1, 1], [], []>} : vector<10x8xf32>, vector<8x128xf32>, vector<10x128xf32> -> vector<10x128xf32>
    %c0_74 = arith.constant 0 : index
    %c0_75 = arith.constant 0 : index
    %130 = vector.load %arg27[%c0_74, %c0_75] : memref<10x1xf32, #tpu.memory_space<vmem>>, vector<10x1xf32>
    %131 = vector.broadcast %130 : vector<10x1xf32> to vector<10x128xf32>
    %132 = arith.addf %129, %131 : vector<10x128xf32>
    %c0_76 = arith.constant 0 : index
    %c0_77 = arith.constant 0 : index
    %133 = vector.load %arg28[%c0_76, %c0_77] : memref<10x128xf32, #tpu.memory_space<vmem>>, vector<10x128xf32>
    tpu.vector_store %arg28[%c0_76, %c0_77], %132 {strides = array<i32>} : memref<10x128xf32, #tpu.memory_space<vmem>>, vector<10x128xf32>,
    return
  }
  func.func @transform_0(%arg0: i32) -> (i32, i32) {
    %c0_i32 = arith.constant 0 : i32
    %c0_i32_0 = arith.constant 0 : i32
    return %c0_i32, %arg0 : i32, i32
  }
  func.func @transform_1(%arg0: i32) -> (i32, i32) {
    %c0_i32 = arith.constant 0 : i32
    %c0_i32_0 = arith.constant 0 : i32
    return %c0_i32, %arg0 : i32, i32
  }
  func.func @transform_2(%arg0: i32) -> (i32, i32) {
    %c0_i32 = arith.constant 0 : i32
    %c0_i32_0 = arith.constant 0 : i32
    return %c0_i32, %arg0 : i32, i32
  }
  func.func @transform_3(%arg0: i32) -> (i32, i32) {
    %c0_i32 = arith.constant 0 : i32
    %c0_i32_0 = arith.constant 0 : i32
    %c0_i32_1 = arith.constant 0 : i32
    return %c0_i32, %c0_i32_0 : i32, i32
  }
  func.func @transform_4(%arg0: i32) -> (i32, i32) {
    %c0_i32 = arith.constant 0 : i32
    %c0_i32_0 = arith.constant 0 : i32
    %c0_i32_1 = arith.constant 0 : i32
    return %c0_i32, %c0_i32_0 : i32, i32
  }
  func.func @transform_5(%arg0: i32) -> (i32, i32) {
    %c0_i32 = arith.constant 0 : i32
    %c0_i32_0 = arith.constant 0 : i32
    %c0_i32_1 = arith.constant 0 : i32
    return %c0_i32, %c0_i32_0 : i32, i32
  }
  func.func @transform_6(%arg0: i32) -> (i32, i32) {
    %c0_i32 = arith.constant 0 : i32
    %c0_i32_0 = arith.constant 0 : i32
    %c0_i32_1 = arith.constant 0 : i32
    return %c0_i32, %c0_i32_0 : i32, i32
  }
  func.func @transform_7(%arg0: i32) -> (i32, i32) {
    %c0_i32 = arith.constant 0 : i32
    %c0_i32_0 = arith.constant 0 : i32
    %c0_i32_1 = arith.constant 0 : i32
    return %c0_i32, %c0_i32_0 : i32, i32
  }
  func.func @transform_8(%arg0: i32) -> (i32, i32) {
    %c0_i32 = arith.constant 0 : i32
    %c0_i32_0 = arith.constant 0 : i32
    %c0_i32_1 = arith.constant 0 : i32
    return %c0_i32, %c0_i32_0 : i32, i32
  }
  func.func @transform_9(%arg0: i32) -> (i32, i32) {
    %c0_i32 = arith.constant 0 : i32
    %c0_i32_0 = arith.constant 0 : i32
    %c0_i32_1 = arith.constant 0 : i32
    return %c0_i32, %c0_i32_0 : i32, i32
  }
  func.func @transform_10(%arg0: i32) -> (i32, i32) {
    %c0_i32 = arith.constant 0 : i32
    %c0_i32_0 = arith.constant 0 : i32
    %c0_i32_1 = arith.constant 0 : i32
    return %c0_i32, %c0_i32_0 : i32, i32
  }
  func.func @transform_11(%arg0: i32) -> (i32, i32) {
    %c0_i32 = arith.constant 0 : i32
    %c0_i32_0 = arith.constant 0 : i32
    %c0_i32_1 = arith.constant 0 : i32
    return %c0_i32, %c0_i32_0 : i32, i32
  }
  func.func @transform_12(%arg0: i32) -> (i32, i32) {
    %c0_i32 = arith.constant 0 : i32
    %c0_i32_0 = arith.constant 0 : i32
    %c0_i32_1 = arith.constant 0 : i32
    return %c0_i32, %c0_i32_0 : i32, i32
  }
  func.func @transform_13(%arg0: i32) -> (i32, i32) {
    %c0_i32 = arith.constant 0 : i32
    %c0_i32_0 = arith.constant 0 : i32
    %c0_i32_1 = arith.constant 0 : i32
    return %c0_i32, %c0_i32_0 : i32, i32
  }
  func.func @transform_14(%arg0: i32) -> (i32, i32) {
    %c0_i32 = arith.constant 0 : i32
    %c0_i32_0 = arith.constant 0 : i32
    %c0_i32_1 = arith.constant 0 : i32
    return %c0_i32, %c0_i32_0 : i32, i32
  }
  func.func @transform_15(%arg0: i32) -> (i32, i32) {
    %c0_i32 = arith.constant 0 : i32
    %c0_i32_0 = arith.constant 0 : i32
    %c0_i32_1 = arith.constant 0 : i32
    return %c0_i32, %c0_i32_0 : i32, i32
  }
  func.func @transform_16(%arg0: i32) -> (i32, i32) {
    %c0_i32 = arith.constant 0 : i32
    %c0_i32_0 = arith.constant 0 : i32
    %c0_i32_1 = arith.constant 0 : i32
    return %c0_i32, %c0_i32_0 : i32, i32
  }
  func.func @transform_17(%arg0: i32) -> (i32, i32) {
    %c0_i32 = arith.constant 0 : i32
    %c0_i32_0 = arith.constant 0 : i32
    %c0_i32_1 = arith.constant 0 : i32
    return %c0_i32, %c0_i32_0 : i32, i32
  }
  func.func @transform_18(%arg0: i32) -> (i32, i32) {
    %c0_i32 = arith.constant 0 : i32
    %c0_i32_0 = arith.constant 0 : i32
    %c0_i32_1 = arith.constant 0 : i32
    return %c0_i32, %c0_i32_0 : i32, i32
  }
  func.func @transform_19(%arg0: i32) -> (i32, i32) {
    %c0_i32 = arith.constant 0 : i32
    %c0_i32_0 = arith.constant 0 : i32
    %c0_i32_1 = arith.constant 0 : i32
    return %c0_i32, %c0_i32_0 : i32, i32
  }
  func.func @transform_20(%arg0: i32) -> (i32, i32) {
    %c0_i32 = arith.constant 0 : i32
    %c0_i32_0 = arith.constant 0 : i32
    %c0_i32_1 = arith.constant 0 : i32
    return %c0_i32, %c0_i32_0 : i32, i32
  }
  func.func @transform_21(%arg0: i32) -> (i32, i32) {
    %c0_i32 = arith.constant 0 : i32
    %c0_i32_0 = arith.constant 0 : i32
    %c0_i32_1 = arith.constant 0 : i32
    return %c0_i32, %c0_i32_0 : i32, i32
  }
  func.func @transform_22(%arg0: i32) -> (i32, i32) {
    %c0_i32 = arith.constant 0 : i32
    %c0_i32_0 = arith.constant 0 : i32
    %c0_i32_1 = arith.constant 0 : i32
    return %c0_i32, %c0_i32_0 : i32, i32
  }
  func.func @transform_23(%arg0: i32) -> (i32, i32) {
    %c0_i32 = arith.constant 0 : i32
    %c0_i32_0 = arith.constant 0 : i32
    %c0_i32_1 = arith.constant 0 : i32
    return %c0_i32, %c0_i32_0 : i32, i32
  }
  func.func @transform_24(%arg0: i32) -> (i32, i32) {
    %c0_i32 = arith.constant 0 : i32
    %c0_i32_0 = arith.constant 0 : i32
    %c0_i32_1 = arith.constant 0 : i32
    return %c0_i32, %c0_i32_0 : i32, i32
  }
  func.func @transform_25(%arg0: i32) -> (i32, i32) {
    %c0_i32 = arith.constant 0 : i32
    %c0_i32_0 = arith.constant 0 : i32
    %c0_i32_1 = arith.constant 0 : i32
    return %c0_i32, %c0_i32_0 : i32, i32
  }
  func.func @transform_26(%arg0: i32) -> (i32, i32) {
    %c0_i32 = arith.constant 0 : i32
    %c0_i32_0 = arith.constant 0 : i32
    %c0_i32_1 = arith.constant 0 : i32
    return %c0_i32, %c0_i32_0 : i32, i32
  }
  func.func @transform_27(%arg0: i32) -> (i32, i32) {
    %c0_i32 = arith.constant 0 : i32
    %c0_i32_0 = arith.constant 0 : i32
    return %c0_i32, %arg0 : i32, i32
  }
}

</mosaic_0001>

<bundles_post_ra>
// kernel: tpu_custom_call.1
= control target key start
LH: loop header
LB: loop body
LE: loop exit
PB: predicated region body
PF: predicated region fallthrough
CT: control target
= control target key end

     0   :  { %s2906_s0 = inlined_call_operand.vmem [shape: f32[100,128], index: 0, kind: input, shape index: {}]   ;;  %s2907_s1 = inlined_call_operand.hbm [shape: f32[36,1152], index: 1, kind: input, shape index: {}]   ;;  %s2908_s2 = inlined_call_operand.vmem [shape: f32[4,1152], index: 2, kind: input, shape index: {}]   ;;  %s2909_s3 = inlined_call_operand.hbm [shape: f32[8,100], index: 3, kind: input, shape index: {}]   ;;  %s2910_s4 = inlined_call_operand.vmem [shape: f32[8,1], index: 4, kind: input, shape index: {}]   ;;  %s2911_s5 = inlined_call_operand.hbm [shape: f32[8,36], index: 5, kind: input, shape index: {}]   ;;  %s2912_s6 = inlined_call_operand.vmem [shape: f32[8,1], index: 6, kind: input, shape index: {}]   ;;  %s2913_s7 = inlined_call_operand.vmem [shape: f32[8,4], index: 7, kind: input, shape index: {}]   ;;  %s2914_s8 = inlined_call_operand.vmem [shape: f32[8,1], index: 8, kind: input, shape index: {}]   ;;  %s2915_s9 = inlined_call_operand.hbm [shape: f32[24,24], index: 9, kind: input, shape index: {}]   ;;  %s2916_s10 = inlined_call_operand.vmem [shape: f32[8,8], index: 10, kind: input, shape index: {}]   ;;  %s2917_s11 = inlined_call_operand.hbm [shape: f32[8,24], index: 11, kind: input, shape index: {}]   ;;  %s2918_s12 = inlined_call_operand.vmem [shape: f32[8,1], index: 12, kind: input, shape index: {}]   ;;  %s2919_s13 = inlined_call_operand.vmem [shape: f32[8,8], index: 13, kind: input, shape index: {}]   ;;  %s2920_s14 = inlined_call_operand.vmem [shape: f32[8,1], index: 14, kind: input, shape index: {}]   ;;  %s2921_s15 = inlined_call_operand.hbm [shape: f32[8,8], index: 15, kind: input, shape index: {}]   ;;  %s2922_s16 = inlined_call_operand.vmem [shape: f32[8,1], index: 16, kind: input, shape index: {}]   ;;  %s2923_s17 = inlined_call_operand.vmem [shape: f32[8,8], index: 17, kind: input, shape index: {}]   ;;  %s2924_s18 = inlined_call_operand.vmem [shape: f32[8,1], index: 18, kind: input, shape index: {}]   ;;  %s2925_s19 = inlined_call_operand.hbm [shape: f32[8,8], index: 19, kind: input, shape index: {}]   ;;  %s2926_s20 = inlined_call_operand.vmem [shape: f32[8,1], index: 20, kind: input, shape index: {}]   ;;  %s2927_s21 = inlined_call_operand.vmem [shape: f32[8,8], index: 21, kind: input, shape index: {}]   ;;  %s2928_s22 = inlined_call_operand.vmem [shape: f32[8,1], index: 22, kind: input, shape index: {}]   ;;  %s2929_s23 = inlined_call_operand.hbm [shape: f32[8,8], index: 23, kind: input, shape index: {}]   ;;  %s2930_s24 = inlined_call_operand.vmem [shape: f32[8,1], index: 24, kind: input, shape index: {}]   ;;  %s2931_s25 = inlined_call_operand.vmem [shape: f32[10,8], index: 25, kind: input, shape index: {}]   ;;  %s2932_s26 = inlined_call_operand.vmem [shape: f32[10,1], index: 26, kind: input, shape index: {}]   ;;  %s2933_s27 = inlined_call_operand.hbm [shape: f32[10,128], index: 27, kind: output, shape index: {}]  }
   0x1   :  { %2937 = sst [smem:[#allocation23_spill]] %s2906_s0 }
   0x2   :  { %2938 = sst [smem:[#allocation24_spill]] %s2907_s1 }
   0x3   :  { %2939 = sst [smem:[#allocation25_spill]] %s2908_s2 }
   0x4   :  { %2940 = sst [smem:[#allocation26_spill]] %s2909_s3 }
   0x5   :  { %2941 = sst [smem:[#allocation27_spill]] %s2910_s4 }
   0x6   :  { %2942 = sst [smem:[#allocation28_spill]] %s2911_s5 }
   0x7   :  { %2943 = sst [smem:[#allocation29_spill]] %s2912_s6 }
   0x8   :  { %2944 = sst [smem:[#allocation30_spill]] %s2913_s7 }
   0x9   :  { %2945 = sst [smem:[#allocation31_spill]] %s2914_s8 }
   0xa   :  { %2946 = sst [smem:[#allocation32_spill]] %s2915_s9 }
   0xb   :  { %2947 = sst [smem:[#allocation33_spill]] %s2916_s10 }
   0xc   :  { %2948 = sst [smem:[#allocation34_spill]] %s2917_s11 }
   0xd   :  { %32 = vsyncpa [#allocation3], 0 }
   0xe   :  { %33 = vsyncpa [#allocation6], 0 }
   0xf   :  { %34 = vsyncpa [#allocation9], 0 }
  0x10   :  { %35 = vsyncpa [#allocation12], 0 }
  0x11   :  { %36 = vsyncpa [#allocation15], 0 }
  0x12   :  { %37 = vsyncpa [#allocation4], 0  ;;  %s2474_s7 = smov [#allocation5]   ;;  %s2475_s8 = smov [#allocation8]  }
  0x13   :  { %s60_s4 = sshll.u32 %s2474_s7, 4  ;;  %s87_s30 = sshll.u32 %s2475_s8, 4  ;;  %s61_s4 = int_to_ptr.vmem [resolvable:$true] %s60_s4  ;;  %s88_s30 = int_to_ptr.vmem [resolvable:$true] %s87_s30 }
  0x14   :  { %s2290_s9 = scalar_lea.vmem %s61_s4, 128  ;;  %p2295_p1 = scmp.lt.s32.totalorder %s61_s4, %s61_s4 }
  0x15   :  { %p2291_p0 = scmp.ne.s32.totalorder %s61_s4, %s2290_s9  ;;  %p2296_p2 = scmp.lt.s32.totalorder %s2290_s9, %s2290_s9 }
  0x17   :  { %p2297_p3 = por %p2296_p2, %p2295_p1 }
  0x19   :  { %p2298_p4 = pnand %p2297_p3, %p2291_p0 }
  0x1b   :  { %2301 = shalt.err (!%p2298_p4)
}
  0x1c   :  { %s2949_s0 = sld [smem:[#allocation26_spill]]  ;;  %s2310_s10 = scalar_lea.vmem %s88_s30, 384 }
  0x1d   :  { %p2311_p5 = scmp.ne.s32.totalorder %s88_s30, %s2310_s10  ;;  %p2315_p6 = scmp.lt.s32.totalorder %s88_s30, %s88_s30 }
  0x1e   :  { %p2316_p7 = scmp.lt.s32.totalorder %s2310_s10, %s2310_s10 }
  0x20   :  { %p2317_p8 = por %p2316_p7, %p2315_p6 }
  0x22   :  { %63 = dma.hbm_to_vmem [thread:$0]  %s2949_s0, 128, %s61_s4, [#allocation6]  }
  0x23   :  { %p2318_p9 = pnand %p2317_p8, %p2311_p5 }
  0x25   :  { %2321 = shalt.err (!%p2318_p9)
}
  0x26   :  { %s2936_s29 = smov 128   ;;  %s2477_s1 = smov 8  }
  0x27   :  { %s2950_s2 = sld [smem:[#allocation32_spill]]  ;;  %s2478_s3 = smov [#allocation11]  }
  0x28   :  { %s118_s7 = sshll.u32 %s2478_s3, 4  ;;  %s2479_s8 = smov [#allocation2]   ;;  %s119_s7 = int_to_ptr.vmem [resolvable:$true] %s118_s7 }
  0x29   :  { %s45_s4 = sshll.u32 %s2479_s8, 4  ;;  %s2330_s9 = scalar_lea.vmem %s119_s7, 128  ;;  %s46_s4 = int_to_ptr.vmem [resolvable:$true] %s45_s4 }
  0x2a   :  { %p2331_p10 = scmp.ne.s32.totalorder %s119_s7, %s2330_s9  ;;  %p2335_p11 = scmp.lt.s32.totalorder %s119_s7, %s119_s7 }
  0x2b   :  { %p2336_p12 = scmp.lt.s32.totalorder %s2330_s9, %s2330_s9 }
  0x2d   :  { %93 = dma.hbm_to_vmem [thread:$0]  %s2950_s2, 384, %s88_s30, [#allocation9], %s2936_s29, %s2936_s29, %s2477_s1  }
  0x2e   :  { %p2337_p13 = por %p2336_p12, %p2335_p11 }
  0x30   :  { %p2338_p0 = pnand %p2337_p13, %p2331_p10 }
  0x32   :  { %2341 = shalt.err (!%p2338_p0)
}
  0x33   :  { %121 = dma.hbm_to_vmem [thread:$0]  %s2921_s15, 128, %s119_s7, [#allocation12]  }
  0x34   :  { %s2350_s0 = scalar_lea.vmem %s46_s4, 5760  ;;  %p2355_p2 = scmp.lt.s32.totalorder %s46_s4, %s46_s4 }
  0x35   :  { %p2351_p1 = scmp.ne.s32.totalorder %s46_s4, %s2350_s0  ;;  %p2356_p3 = scmp.lt.s32.totalorder %s2350_s0, %s2350_s0 }
  0x37   :  { %p2357_p4 = por %p2356_p3, %p2355_p2 }
  0x39   :  { %p2358_p5 = pnand %p2357_p4, %p2351_p1 }
  0x3b   :  { %2361 = shalt.err (!%p2358_p5)
}
  0x3c   :  { %s2480_s30 = smov 1152   ;;  %s2481_s10 = smov 72  }
  0x3d   :  { %s2951_s2 = sld [smem:[#allocation24_spill]]  ;;  %s2482_s3 = smov [#allocation7]  }
  0x3e   :  { %s72_s8 = sshll.u32 %s2482_s3, 4  ;;  %s2483_s9 = smov [#allocation10]   ;;  %s73_s8 = int_to_ptr.vmem [resolvable:$true] %s72_s8 }
  0x3f   :  { %s102_s29 = sshll.u32 %s2483_s9, 4  ;;  %s2370_s15 = scalar_lea.vmem %s73_s8, 128  ;;  %s103_s29 = int_to_ptr.vmem [resolvable:$true] %s102_s29 }
  0x40   :  { %p2371_p6 = scmp.ne.s32.totalorder %s73_s8, %s2370_s15  ;;  %p2375_p7 = scmp.lt.s32.totalorder %s73_s8, %s73_s8 }
  0x41   :  { %p2376_p8 = scmp.lt.s32.totalorder %s2370_s15, %s2370_s15 }
  0x43   :  { %51 = dma.hbm_to_vmem [thread:$0]  %s2951_s2, 5760, %s46_s4, [#allocation3], %s2480_s30, %s2480_s30, %s2481_s10  }
  0x44   :  { %p2377_p9 = por %p2376_p8, %p2375_p7 }
  0x46   :  { %p2378_p10 = pnand %p2377_p9, %p2371_p6 }
  0x48   :  { %2381 = shalt.err (!%p2378_p10)
}
  0x49   :  { %s2952_s28 = sld [smem:[#allocation28_spill]]  ;;  %s2390_s0 = scalar_lea.vmem %s103_s29, 128 }
  0x4a   :  { %p2391_p11 = scmp.ne.s32.totalorder %s103_s29, %s2390_s0  ;;  %p2395_p12 = scmp.lt.s32.totalorder %s103_s29, %s103_s29 }
  0x4b   :  { %p2396_p13 = scmp.lt.s32.totalorder %s2390_s0, %s2390_s0 }
  0x4d   :  { %p2397_p0 = por %p2396_p13, %p2395_p12 }
  0x4f   :  { %75 = dma.hbm_to_vmem [thread:$0]  %s2952_s28, 128, %s73_s8, [#allocation6]  }
  0x50   :  { %p2398_p1 = pnand %p2397_p0, %p2391_p11 }
  0x52   :  { %2401 = shalt.err (!%p2398_p1)
}
  0x53   :  { %s2953_s10 = sld [smem:[#allocation34_spill]]  ;;  %s2484_s6 = smov [#allocation13]  }
  0x54   :  { %s134_s11 = sshll.u32 %s2484_s6, 4  ;;  %s2485_s2 = smov [#allocation14]   ;;  %s135_s11 = int_to_ptr.vmem [resolvable:$true] %s134_s11 }
  0x55   :  { %s150_s3 = sshll.u32 %s2485_s2, 4  ;;  %s2410_s9 = scalar_lea.vmem %s135_s11, 128  ;;  %s151_s3 = int_to_ptr.vmem [resolvable:$true] %s150_s3 }
  0x56   :  { %p2411_p2 = scmp.ne.s32.totalorder %s135_s11, %s2410_s9  ;;  %p2415_p3 = scmp.lt.s32.totalorder %s135_s11, %s135_s11 }
  0x57   :  { %p2416_p4 = scmp.lt.s32.totalorder %s2410_s9, %s2410_s9 }
  0x59   :  { %105 = dma.hbm_to_vmem [thread:$0]  %s2953_s10, 128, %s103_s29, [#allocation9]  }
  0x5a   :  { %p2417_p5 = por %p2416_p4, %p2415_p3 }
  0x5c   :  { %p2418_p6 = pnand %p2417_p5, %p2411_p2 }
  0x5e   :  { %2421 = shalt.err (!%p2418_p6)
}
  0x5f   :  { %137 = dma.hbm_to_vmem [thread:$0]  %s2925_s19, 128, %s135_s11, [#allocation12]  }
  0x60   :  { %s2430_s7 = scalar_lea.vmem %s151_s3, 128  ;;  %p2435_p8 = scmp.lt.s32.totalorder %s151_s3, %s151_s3 }
  0x61   :  { %p2431_p7 = scmp.ne.s32.totalorder %s151_s3, %s2430_s7  ;;  %p2436_p9 = scmp.lt.s32.totalorder %s2430_s7, %s2430_s7 }
  0x63   :  { %p2437_p10 = por %p2436_p9, %p2435_p8 }
  0x65   :  { %p2438_p11 = pnand %p2437_p10, %p2431_p7 }
  0x67   :  { %2441 = shalt.err (!%p2438_p11)
}
  0x68   :  { %153 = dma.hbm_to_vmem [thread:$0]  %s2929_s23, 128, %s151_s3, [#allocation15]  }
  0x69   :  { %2462 = dma.done.wait [#allocation3], 5760  }
  0x6a   :  { %2463 = vsyncadd [#allocation3], 4294961536 }
  0x6b   :  { %2464 = dma.done.wait [#allocation6], 256  }
  0x6c   :  { %2465 = vsyncadd [#allocation6], 4294967040 }
  0x6d   :  { %2466 = dma.done.wait [#allocation9], 512  }
  0x6e   :  { %2467 = vsyncadd [#allocation9], 4294966784 }
  0x6f   :  { %2468 = dma.done.wait [#allocation12], 256  }
  0x70   :  { %2469 = vsyncadd [#allocation12], 4294967040 }
  0x71   :  { %2470 = dma.done.wait [#allocation15], 128  }
  0x72   :  { %2471 = vsyncadd [#allocation15], 4294967168  ;;  %v2486_v0 = vmov 0.0   ;;  %vm2487_vm0 = vmmov 0   ;;  %v2488_v1 = vmov 0   ;;  %vm208_vm1 = vcmask 1043456  }
  0x73   :  { %2133 = vmatprep.subr.mxu0 %v2486_v0  ;;  %423 = vmatprep.mubr.f32.mxu1 %v2486_v0  ;;  %s2954_s28 = sld [smem:[#allocation23_spill]]  ;;  %v320_v3 = vld [vmem:[#allocation2 + $0x128] sm:$0xf]  ;;  %v319_v4 = vld [vmem:[#allocation2 + $0x120] sm:$0xf]  ;;  %v310_v7 = vld [vmem:[#allocation2 + $0xd8] sm:$0xff] }
  0x74   :  { %2159 = vmatprep.mubr.msk.f32.mxu0 %vm2487_vm0, %v2486_v0  ;;  %2261 = vset.pattern.permute.xlu1 %v2488_v1  ;;  %v311_v6 = vld [vmem:[#allocation2 + $0xe0] sm:$0xff]  ;;  %v302_v9 = vld [vmem:[#allocation2 + $0x98] sm:$0xff]  ;;  %v301_v10 = vld [vmem:[#allocation2 + $0x90] sm:$0xff]  ;;  %vm328_vm2 = vcmask 293888   ;;  %vm204_vm3 = vcmask 818176   ;;  %s2955_s8 = sld [smem:[#allocation25_spill]] }
  0x75   :  { %2260 = vset.pattern.permute.xlu0 %v2488_v1  ;;  %2043 = vmatprep.subr.msk.mxu1 %vm208_vm1, %v320_v3  ;;  %v293_v12 = vld [vmem:[#allocation2 + $0x50] sm:$0xff]  ;;  %v292_v13 = vld [vmem:[#allocation2 + $0x48] sm:$0xff]  ;;  %v283_v16 = vld [vmem:[#allocation2] sm:$0xff]  ;;  %s2956_s0 = sld [smem:[#allocation30_spill]]  ;;  %vm743_vm4 = vcmask 31744   ;;  %vm1141_vm5 = vcmask 195584  }
  0x76   :  { %2044 = vmatpush1.msk.msra.mxu1 %vm208_vm1, %v319_v4  ;;  %v284_v15 = vld [vmem:[#allocation2 + $0x8] sm:$0xff]  ;;  %v322_v18 = vld [vmem:[#allocation2 + $0x138] sm:$0xf]  ;;  %v2686_v19 = vld [vmem:[#allocation7] sm:$0xff]  ;;  %s2957_s3 = sld [smem:[#allocation27_spill]]  ;;  %vm1349_vm12 = vcmask 64512  }
  0x77   :  { %383 = vmatprep.subr.mxu1 %v311_v6  ;;  %v321_v20 = vld [vmem:[#allocation2 + $0x130] sm:$0xf]  ;;  %v312_v23 = vld [vmem:[#allocation2 + $0xe8] sm:$0xff]  ;;  %v303_v26 = vld [vmem:[#allocation2 + $0xa0] sm:$0xff]  ;;  %s2958_s15 = sld [smem:[#allocation31_spill]] }
  0x78   :  { %384 = vmatpush1.msra.mxu1 %v310_v7  ;;  %v313_v22 = vld [vmem:[#allocation2 + $0xf0] sm:$0xff]  ;;  %v304_v25 = vld [vmem:[#allocation2 + $0xa8] sm:$0xff]  ;;  %v295_v28 = vld [vmem:[#allocation2 + $0x60] sm:$0xff]  ;;  %s2959_s19 = sld [smem:[#allocation29_spill]] }
  0x79   :  { %v197_v2 = vld [vmem:[%s2954_s28 + $0x60] sm:$0xf]  ;;  %v196_v5 = vld [vmem:[%s2954_s28 + $0x58] sm:$0xff]  ;;  %v195_v8 = vld [vmem:[%s2954_s28 + $0x50] sm:$0xff]  ;;  %385 = vmatprep.subr.mxu1 %v302_v9 }
  0x7a   :  { %2134 = vmatpush3.msk.msra.mxu0 %vm208_vm1, %v197_v2  ;;  %v194_v11 = vld [vmem:[%s2954_s28 + $0x48] sm:$0xff]  ;;  %386 = vmatpush1.msra.mxu1 %v301_v10  ;;  %v193_v14 = vld [vmem:[%s2954_s28 + $0x40] sm:$0xff]  ;;  %v192_v17 = vld [vmem:[%s2954_s28 + $0x38] sm:$0xff] }
  0x7b   :  { %2135 = vmatprep.subr.mxu0 %v2486_v0  ;;  %387 = vmatprep.subr.mxu1 %v293_v12  ;;  %v191_v21 = vld [vmem:[%s2954_s28 + $0x30] sm:$0xff]  ;;  %v190_v24 = vld [vmem:[%s2954_s28 + $0x28] sm:$0xff]  ;;  %v189_v27 = vld [vmem:[%s2954_s28 + $0x20] sm:$0xff] }
  0x7c   :  { %2136 = vmatpush3.msra.mxu0 %v196_v5  ;;  %388 = vmatpush1.msra.mxu1 %v292_v13  ;;  %v294_v29 = vld [vmem:[#allocation2 + $0x58] sm:$0xff]  ;;  %v285_v32 = vld [vmem:[#allocation2 + $0x10] sm:$0xff]  ;;  %v324_v34 = vld [vmem:[#allocation2 + $0x148] sm:$0xf] }
  0x7d   :  { %2137 = vmatprep.subr.mxu0 %v2486_v0  ;;  %389 = vmatprep.subr.mxu1 %v284_v15  ;;  %v188_v30 = vld [vmem:[%s2954_s28 + $0x18] sm:$0xff]  ;;  %v187_v33 = vld [vmem:[%s2954_s28 + $0x10] sm:$0xff]  ;;  %v323_v35 = vld [vmem:[#allocation2 + $0x140] sm:$0xf] }
  0x7e   :  { %2138 = vmatpush3.msra.mxu0 %v195_v8  ;;  %390 = vmatpush1.msra.mxu1 %v283_v16  ;;  %v286_v31 = vld [vmem:[#allocation2 + $0x18] sm:$0xff]  ;;  %v186_v36 = vld [vmem:[%s2954_s28 + $0x8] sm:$0xff]  ;;  %v315_v37 = vld [vmem:[#allocation2 + $0x100] sm:$0xff] }
  0x7f   :  { %2139 = vmatprep.subr.mxu0 %v2486_v0  ;;  %2046 = vmatprep.subr.msk.mxu1 %vm208_vm1, %v322_v18  ;;  %v314_v38 = vld [vmem:[#allocation2 + $0xf8] sm:$0xff]  ;;  %v185_v39 = vld [vmem:[%s2954_s28] sm:$0xff]  ;;  %v184_v41 = vld [vmem:[#allocation5] sm:$0xff] }
  0x80   :  { %2140 = vmatpush3.msra.mxu0 %v194_v11  ;;  %2045 = vmatmul.mubr.msk.f32.vlgmr.msra.gmra.mxu1 %vm328_vm2, %v2686_v19  ;;  %v306_v40 = vld [vmem:[#allocation2 + $0xb8] sm:$0xff]  ;;  %v305_v42 = vld [vmem:[#allocation2 + $0xb0] sm:$0xff]  ;;  %v296_v46 = vld [vmem:[#allocation2 + $0x68] sm:$0xff] }
  0x81   :  { %2141 = vmatprep.subr.mxu0 %v2486_v0  ;;  %2047 = vmatpush1.msk.msra.mxu1 %vm208_vm1, %v321_v20  ;;  %v326_v43 = vld [vmem:[#allocation2 + $0x158] sm:$0xf]  ;;  %v297_v44 = vld [vmem:[#allocation2 + $0x70] sm:$0xff]  ;;  %v288_v48 = vld [vmem:[#allocation2 + $0x28] sm:$0xff] }
  0x82   :  { %2142 = vmatpush3.msra.mxu0 %v193_v14  ;;  %454 = vmatprep.subr.mxu1 %v313_v22  ;;  %v325_v45 = vld [vmem:[#allocation2 + $0x150] sm:$0xf]  ;;  %v316_v49 = vld [vmem:[#allocation2 + $0x108] sm:$0xff]  ;;  %v287_v50 = vld [vmem:[#allocation2 + $0x20] sm:$0xff] }
  0x83   :  { %2143 = vmatprep.subr.mxu0 %v2486_v0  ;;  %455 = vmatpush1.msra.mxu1 %v312_v23  ;;  %v317_v47 = vld [vmem:[#allocation2 + $0x110] sm:$0xff]  ;;  %v308_v51 = vld [vmem:[#allocation2 + $0xc8] sm:$0xff]  ;;  %v307_v52 = vld [vmem:[#allocation2 + $0xc0] sm:$0xff] }
  0x84   :  { %2144 = vmatpush3.msra.mxu0 %v192_v17  ;;  %456 = vmatprep.subr.mxu1 %v304_v25  ;;  %v299_v53 = vld [vmem:[#allocation2 + $0x80] sm:$0xff]  ;;  %v298_v55 = vld [vmem:[#allocation2 + $0x78] sm:$0xff]  ;;  %v289_v59 = vld [vmem:[#allocation2 + $0x30] sm:$0xff] }
  0x85   :  { %2145 = vmatprep.subr.mxu0 %v2486_v0  ;;  %457 = vmatpush1.msra.mxu1 %v303_v26  ;;  %v327_v54 = vld [vmem:[#allocation2 + $0x160] sm:$0xf]  ;;  %v290_v57 = vld [vmem:[#allocation2 + $0x38] sm:$0xff]  ;;  %v309_v61 = vld [vmem:[#allocation2 + $0xd0] sm:$0xff] }
  0x86   :  { %2146 = vmatpush3.msra.mxu0 %v191_v21  ;;  %458 = vmatprep.subr.mxu1 %v295_v28  ;;  %v729_v56 = vld [vmem:[%s2955_s8] sm:$0xff]  ;;  %v318_v58 = vld [vmem:[#allocation2 + $0x118] sm:$0xff]  ;;  %v730_v62 = vld [vmem:[%s2955_s8 + $0x8] sm:$0xff] }
  0x87   :  { %2147 = vmatprep.subr.mxu0 %v2486_v0  ;;  %459 = vmatpush1.msra.mxu1 %v294_v29  ;;  %v739_v60 = vcombine.high %v729_v56, %v729_v56  ;;  %v300_v63 = vld [vmem:[#allocation2 + $0x88] sm:$0xff]  ;;  %v731_v1 = vld [vmem:[%s2955_s8 + $0x10] sm:$0xff]  ;;  %v291_v2 = vld [vmem:[#allocation2 + $0x40] sm:$0xff]  ;;  %v740_v4 = vcombine.high %v730_v62, %v730_v62 }
  0x88   :  { %2148 = vmatpush3.msra.mxu0 %v190_v24  ;;  %460 = vmatprep.subr.mxu1 %v286_v31  ;;  %v728_v3 = vld [vmem:[%s2956_s0] sm:$0xff]  ;;  %v732_v5 = vld [vmem:[%s2955_s8 + $0x18] sm:$0xff]  ;;  %v741_v6 = vcombine.high %v731_v1, %v731_v1  ;;  %s2489_s0 = smov [#allocation16]  }
  0x89   :  { %2149 = vmatprep.subr.mxu0 %v2486_v0  ;;  %461 = vmatpush1.msra.mxu1 %v285_v32  ;;  %v742_v7 = vcombine.high %v732_v5, %v732_v5  ;;  %v733_v8 = vld [vmem:[%s2955_s8 + $0x20] sm:$0xf] }
  0x8a   :  { %2150 = vmatpush3.msra.mxu0 %v189_v27  ;;  %494 = vmatprep.mubr.f32.mxu1 %v2486_v0  ;;  %v198_v9 = vld [vmem:[%s2957_s3] sm:$0xff] }
  0x8b   :  { %2151 = vmatprep.subr.mxu0 %v2486_v0  ;;  %2048 = vmatmul.mubr.msk.f32.vlgmr.msra.gmra.mxu1 %vm328_vm2, %v2686_v19  ;;  %v1128_v10 = vld [vmem:[%s2958_s15] sm:$0xff] }
  0x8c   :  { %2152 = vmatpush3.msra.mxu0 %v188_v30  ;;  %2049 = vmatprep.subr.msk.mxu1 %vm208_vm1, %v324_v34  ;;  %v1268_v11 = vld [vmem:[%s2918_s12] sm:$0xff]  ;;  %s2025_s12 = sshll.u32 %s2489_s0, 4  ;;  %s2026_s12 = int_to_ptr.vmem [resolvable:$true] %s2025_s12 }
  0x8d   :  { %2153 = vmatprep.subr.mxu0 %v2486_v0  ;;  %2050 = vmatpush1.msk.msra.mxu1 %vm208_vm1, %v323_v35  ;;  %v721_v12 = vld [vmem:[%s2959_s19] sm:$0xff]  ;;  %s2442_s4 = scalar_lea.vmem %s2026_s12, 256  ;;  %p2447_p13 = scmp.lt.s32.totalorder %s2026_s12, %s2026_s12 }
  0x8e   :  { %2154 = vmatpush3.msra.mxu0 %v187_v33  ;;  %525 = vmatprep.subr.mxu1 %v315_v37  ;;  %v1517_v13 = vld [vmem:[%s2922_s16] sm:$0xff]  ;;  %p2443_p12 = scmp.ne.s32.totalorder %s2026_s12, %s2442_s4  ;;  %p2448_p0 = scmp.lt.s32.totalorder %s2442_s4, %s2442_s4 }
  0x8f   :  { %2155 = vmatprep.subr.mxu0 %v2486_v0  ;;  %526 = vmatpush1.msra.mxu1 %v314_v38  ;;  %v1436_v14 = vld [vmem:[%s2920_s14] sm:$0xff] }
  0x90   :  { %2156 = vmatpush3.msra.mxu0 %v186_v36  ;;  %527 = vmatprep.subr.mxu1 %v306_v40  ;;  %v1680_v15 = vld [vmem:[%s2926_s20] sm:$0xff]  ;;  %p2449_p1 = por %p2448_p0, %p2447_p13 }
  0x91   :  { %2157 = vmatprep.subr.mxu0 %v2486_v0  ;;  %528 = vmatpush1.msra.mxu1 %v305_v42  ;;  %v1599_v16 = vld [vmem:[%s2924_s18] sm:$0xff] }
  0x92   :  { %2158 = vmatpush3.msra.mxu0 %v185_v39  ;;  %529 = vmatprep.subr.mxu1 %v297_v44  ;;  %v1843_v17 = vld [vmem:[%s2930_s24] sm:$0xff]  ;;  %s2960_s24 = sld [smem:[#allocation33_spill]]  ;;  %p2450_p2 = pnand %p2449_p1, %p2443_p12 }
  0x93   :  { %2160 = vmatmul.mubr.msk.f32.vlgmr.msra.gmra.mxu0 %vm204_vm3, %v184_v41  ;;  %2052 = vmatprep.subr.msk.mxu0 %vm208_vm1, %v326_v43  ;;  %v1762_v18 = vld [vmem:[%s2928_s22] sm:$0xff] }
  0x94   :  { %2053 = vmatpush1.msk.msra.mxu0 %vm208_vm1, %v325_v45  ;;  %530 = vmatpush1.msra.mxu1 %v296_v46  ;;  %v1925_v20 = vld [vmem:[%s2932_s26] sm:$0xff] }
  0x95   :  { %596 = vmatprep.subr.mxu0 %v317_v47  ;;  %531 = vmatprep.subr.mxu1 %v288_v48 }
  0x96   :  { %597 = vmatpush1.msra.mxu0 %v316_v49  ;;  %532 = vmatpush1.msra.mxu1 %v287_v50 }
  0x97   :  { %565 = vmatprep.mubr.f32.mxu1 %v2486_v0  ;;  %598 = vmatprep.subr.mxu0 %v308_v51 }
  0x98   :  { %2051 = vmatmul.mubr.msk.f32.vlgmr.msra.gmra.mxu1 %vm328_vm2, %v2686_v19  ;;  %599 = vmatpush1.msra.mxu0 %v307_v52 }
  0x99   :  { %2162 = vmatprep.subr.mxu1 %v2486_v0  ;;  %600 = vmatprep.subr.mxu0 %v299_v53 }
  0x9a   :  { %2163 = vmatpush3.msk.msra.mxu1 %vm208_vm1, %v327_v54  ;;  %601 = vmatpush1.msra.mxu0 %v298_v55 }
  0x9b   :  { %2164 = vmatprep.subr.mxu1 %v2486_v0  ;;  %602 = vmatprep.subr.mxu0 %v290_v57 }
  0x9c   :  { %2165 = vmatpush3.msra.mxu1 %v318_v58  ;;  %603 = vmatpush1.msra.mxu0 %v289_v59 }
  0x9d   :  { %636 = vmatprep.mubr.f32.mxu0 %v2486_v0  ;;  %2166 = vmatprep.subr.mxu1 %v2486_v0 }
  0x9e   :  { %2054 = vmatmul.mubr.msk.f32.vlgmr.msra.gmra.mxu0 %vm328_vm2, %v2686_v19  ;;  %2167 = vmatpush3.msra.mxu1 %v309_v61 }
  0x9f   :  { %2057 = vmatprep.subr.msk.mxu0 %vm208_vm1, %v739_v60  ;;  %2168 = vmatprep.subr.mxu1 %v2486_v0 }
  0xa0   :  { %2058 = vmatpush1.msk.msra.mxu0 %vm208_vm1, %v729_v56  ;;  %2169 = vmatpush3.msra.mxu1 %v300_v63 }
  0xa1   :  { %829 = vmatprep.mubr.f32.mxu0 %v2486_v0  ;;  %2170 = vmatprep.subr.mxu1 %v2486_v0 }
  0xa2   :  { %2172 = vmatprep.mubr.msk.f32.mxu1 %vm2487_vm0, %v2486_v0  ;;  %2171 = vmatpush3.msra.mxu1 %v291_v2 }
  0xa3   :  { %2059 = vmatmul.mubr.msk.f32.vlgmr.msra.gmra.mxu0 %vm743_vm4, %v728_v3  ;;  %2173 = vmatmul.mubr.msk.f32.vlgmr.msra.gmra.mxu1 %vm328_vm2, %v2686_v19  ;;  %v1926_v19 = vld [vmem:[%s2932_s26 + $0x8] sm:$0x3] }
  0xa4   :  { %2060 = vmatprep.subr.msk.mxu0 %vm208_vm1, %v740_v4  ;;  %900 = vmatprep.mubr.f32.mxu0 %v2486_v0 }
  0xa5   :  { %2061 = vmatpush1.msk.msra.mxu0 %vm208_vm1, %v730_v62  ;;  %2063 = vmatprep.subr.msk.mxu1 %vm208_vm1, %v741_v6  ;;  %v1135_v6 = vld [vmem:[#allocation8] sm:$0xff] }
  0xa6   :  { %971 = vmatprep.mubr.f32.mxu1 %v2486_v0  ;;  %2064 = vmatpush1.msk.msra.mxu1 %vm208_vm1, %v731_v1 }
  0xa7   :  { %2062 = vmatmul.mubr.msk.f32.vlgmr.msra.gmra.mxu0 %vm743_vm4, %v728_v3  ;;  %2065 = vmatmul.mubr.msk.f32.vlgmr.msra.gmra.mxu1 %vm743_vm4, %v728_v3 }
  0xa8   :  { %2066 = vmatprep.subr.msk.mxu0 %vm208_vm1, %v742_v7  ;;  %1042 = vmatprep.mubr.f32.mxu0 %v2486_v0  ;;  %v1136_v7 = vld [vmem:[#allocation8 + $0x8] sm:$0xff] }
  0xa9   :  { %2067 = vmatpush1.msk.msra.mxu0 %vm208_vm1, %v732_v5  ;;  %2175 = vmatprep.subr.mxu1 %v2486_v0 }
  0xaa   :  { %2177 = vmatprep.mubr.msk.f32.mxu1 %vm2487_vm0, %v2486_v0  ;;  %2176 = vmatpush3.msk.msra.mxu1 %vm208_vm1, %v733_v8  ;;  %v1137_v8 = vld [vmem:[#allocation8 + $0x10] sm:$0xff] }
  0xab   :  { %2068 = vmatmul.mubr.msk.f32.vlgmr.msra.gmra.mxu0 %vm743_vm4, %v728_v3  ;;  %2178 = vmatmul.mubr.msk.f32.vlgmr.msra.gmra.mxu1 %vm743_vm4, %v728_v3 }
  0xac   :  { %201 = vperm.xlu1 %2261, %v198_v9   ;;  %1131 = vperm.xlu0 %2260, %v1128_v10  }
  0xad   :  { %2180 = vmatprep.subr.mxu0 %v2486_v0  ;;  %2186 = vmatprep.mubr.msk.f32.mxu0 %vm2487_vm0, %v2486_v0 }
  0xae   :  { %2195 = vmatprep.subr.mxu1 %v2486_v0  ;;  %2201 = vmatprep.mubr.msk.f32.mxu1 %vm2487_vm0, %v2486_v0 }
  0xb0   :  { %1271 = vperm.xlu1 %2261, %v1268_v11   ;;  %724 = vperm.xlu0 %2260, %v721_v12  }
  0xb4   :  { %1520 = vperm.xlu1 %2261, %v1517_v13   ;;  %1439 = vperm.xlu0 %2260, %v1436_v14  }
  0xb8   :  { %1683 = vperm.xlu1 %2261, %v1680_v15   ;;  %1602 = vperm.xlu0 %2260, %v1599_v16  }
  0xbc   :  { %1846 = vperm.xlu1 %2261, %v1843_v17   ;;  %1765 = vperm.xlu0 %2260, %v1762_v18  }
  0xc0   :  { %1934 = vperm.xlu1 %2261, %v1926_v19   ;;  %1929 = vperm.xlu0 %2260, %v1925_v20  }
 0x127   :  { %v1132_v53 = vpop.permute.xlu0 %1131  ;;  %v202_v62 = vpop.permute.xlu1 %201 }
 0x12b   :  { %v725_v60 = vpop.permute.xlu0 %724 }
 0x140   :  { %v425_v21 = vpop.f32.mrf.mxu1 }
 0x142   :  { %v427_v24 = vpop.f32.mrf.mxu1 }
 0x143   :  { %v713_v26 = vmax.f32 %v425_v21, %v427_v24 }
 0x14b   :  { %v496_v25 = vpop.f32.mrf.mxu1 }
 0x14c   :  { %v714_v28 = vmax.f32 %v713_v26, %v496_v25 }
 0x14d   :  { %v498_v27 = vpop.f32.mrf.mxu1 }
 0x14e   :  { %v715_v32 = vmax.f32 %v714_v28, %v498_v27 }
 0x153   :  { %v278_v22 = vpop.f32.mrf.mxu0 }
 0x154   :  { %v2829_v2 = vadd.f32 %v278_v22, %v202_v62 }
 0x155   :  { %v2161_v23 = vpop.f32.mrf.mxu0 }
 0x156   :  { %v1138_v5 = vmul.f32 %v2829_v2, %v2829_v2 }
 0x158   :  { %v567_v29 = vpop.f32.mrf.mxu1 }
 0x159   :  { %v716_v35 = vmax.f32 %v715_v32, %v567_v29 }
 0x15a   :  { %v569_v33 = vpop.f32.mrf.mxu1 }
 0x15b   :  { %v717_v41 = vmax.f32 %v716_v35, %v569_v33 }
 0x15e   :  { %v638_v30 = vpop.f32.mrf.mxu0 }
 0x15f   :  { %v718_v47 = vmax.f32 %v717_v41, %v638_v30 }
 0x160   :  { %v640_v31 = vpop.f32.mrf.mxu0 }
 0x161   :  { %v719_v54 = vmax.f32 %v718_v47, %v640_v31 }
 0x163   :  { %v831_v34 = vpop.f32.mrf.mxu0  ;;  %v709_v36 = vpop.f32.mrf.mxu1 }
 0x164   :  { %v720_v58 = vmax.f32 %v719_v54, %v709_v36 }
 0x165   :  { %v833_v37 = vpop.f32.mrf.mxu0  ;;  %v2174_v39 = vpop.f32.mrf.mxu1 }
 0x166   :  { %v1119_v38 = vmax.f32 %v831_v34, %v833_v37  ;;  %v2825_v63 = vadd.f32 %v725_v60, %v720_v58 }
 0x167   :  { %v902_v40 = vpop.f32.mrf.mxu0  ;;  %v973_v43 = vpop.f32.mrf.mxu1 }
 0x168   :  { %v1120_v42 = vmax.f32 %v1119_v38, %v902_v40  ;;  %v1139_v4 = vmul.f32 %v2825_v63, %v2825_v63 }
 0x169   :  { %v904_v44 = vpop.f32.mrf.mxu0  ;;  %v975_v46 = vpop.f32.mrf.mxu1 }
 0x16a   :  { %v1121_v45 = vmax.f32 %v1120_v42, %v904_v44 }
 0x16b   :  { %v1115_v49 = vpop.f32.mrf.mxu1  ;;  %v1044_v50 = vpop.f32.mrf.mxu0 }
 0x16c   :  { %v1122_v48 = vmax.f32 %v1121_v45, %v973_v43  ;;  %v1267_v45 = vld [vmem:[#allocation10] sm:$0xff] }
 0x16d   :  { %v2179_v52 = vpop.f32.mrf.mxu1  ;;  %v1046_v56 = vpop.f32.mrf.mxu0 }
 0x16e   :  { %v1123_v51 = vmax.f32 %v1122_v48, %v975_v46  ;;  %v1272_v46 = vpop.permute.xlu1 %1271 }
 0x170   :  { %v1124_v55 = vmax.f32 %v1123_v51, %v1044_v50  ;;  %v1347_v51 = vld [vmem:[%s2960_s24] sm:$0xff] }
 0x172   :  { %v1125_v57 = vmax.f32 %v1124_v55, %v1046_v56 }
 0x174   :  { %v1126_v59 = vmax.f32 %v1125_v57, %v1115_v49 }
 0x176   :  { %v1127_v61 = vmax.f32 %v1126_v59, 0.0 }
 0x178   :  { %v2827_v1 = vadd.f32 %v1132_v53, %v1127_v61 }
 0x17a   :  { %v1140_v3 = vmul.f32 %v2827_v1, %v2827_v1 }
 0x17c   :  { %2181 = vmatpush3.msra.mxu0 %v1140_v3 }
 0x17d   :  { %2182 = vmatprep.subr.mxu0 %v2486_v0 }
 0x17e   :  { %2183 = vmatpush3.msra.mxu0 %v1139_v4 }
 0x17f   :  { %2184 = vmatprep.subr.mxu0 %v2486_v0 }
 0x180   :  { %2185 = vmatpush3.msra.mxu0 %v1138_v5 }
 0x181   :  { %2187 = vmatmul.mubr.msk.f32.vlgmr.msra.gmra.mxu0 %vm1141_vm5, %v1135_v6  ;;  %2214 = vmatprep.subr.mxu0 %v2486_v0 }
 0x182   :  { %2189 = vmatprep.mubr.msk.f32.mxu0 %vm2487_vm0, %v2486_v0 }
 0x185   :  { %2190 = vmatmul.mubr.msk.f32.gmra.mxu0 %vm1141_vm5, %v1136_v7  ;;  %v1516_v7 = vld [vmem:[#allocation11] sm:$0xff] }
 0x186   :  { %2192 = vmatprep.mubr.msk.f32.mxu0 %vm2487_vm0, %v2486_v0 }
 0x189   :  { %2193 = vmatmul.mubr.msk.f32.gmra.mxu0 %vm1141_vm5, %v1137_v8  ;;  %v1521_v8 = vpop.permute.xlu1 %1520 }
 0x18a   :  { %2216 = vmatprep.mubr.msk.f32.mxu0 %vm2487_vm0, %v2486_v0 }
 0x241   :  { %v1217_v9 = vpop.f32.mrf.mxu0 }
 0x242   :  { %v1218_v10 = vadd.f32 1.0, %v1217_v9 }
 0x243   :  { %v2188_v11 = vpop.f32.mrf.mxu0 }
 0x244   :  { %2266 = vrsqrt.f32 %v1218_v10  ;;  %vm1236_vm6 = vcmp.eq.f32.partialorder %v1218_v10, inf  ;;  %v1239_v23 = vand.u32 2147483648, %v1218_v10  ;;  %vm1238_vm8 = vcmp.eq.f32.partialorder %v1218_v10, 0.0 }
 0x245   :  { %v1222_v12 = vpop.f32.mrf.mxu0 }
 0x246   :  { %v1223_v13 = vadd.f32 1.0, %v1222_v12 }
 0x247   :  { %v2191_v14 = vpop.f32.mrf.mxu0 }
 0x248   :  { %2268 = vrsqrt.f32 %v1223_v13  ;;  %vm1243_vm7 = vcmp.eq.f32.partialorder %v1223_v13, inf  ;;  %v1246_v24 = vand.u32 2147483648, %v1223_v13  ;;  %vm1245_vm9 = vcmp.eq.f32.partialorder %v1223_v13, 0.0  ;;  %v1598_v14 = vld [vmem:[%s2923_s17] sm:$0xff] }
 0x249   :  { %v1227_v15 = vpop.f32.mrf.mxu0 }
 0x24a   :  { %v1228_v16 = vadd.f32 1.0, %v1227_v15 }
 0x24b   :  { %v2194_v17 = vpop.f32.mrf.mxu0 }
 0x24c   :  { %2270 = vrsqrt.f32 %v1228_v16  ;;  %vm1250_vm10 = vcmp.eq.f32.partialorder %v1228_v16, inf  ;;  %v1253_v30 = vand.u32 2147483648, %v1228_v16  ;;  %vm1252_vm11 = vcmp.eq.f32.partialorder %v1228_v16, 0.0 }
 0x251   :  { %v2267_v18 = vpop.eup %2266 }
 0x252   :  { %v1235_v19 = vmul.f32 %v2267_v18, %v1218_v10 }
 0x254   :  { %v1237_v21 = vsel %vm1236_vm6, %v1218_v10, %v1235_v19 }
 0x255   :  { %v2269_v20 = vpop.eup %2268  ;;  %v1240_v27 = vsel %vm1238_vm8, %v1239_v23, %v1237_v21  ;;  %v1684_v21 = vpop.permute.xlu1 %1683 }
 0x256   :  { %v1242_v22 = vmul.f32 %v2269_v20, %v1223_v13 }
 0x258   :  { %v1244_v25 = vsel %vm1243_vm7, %v1223_v13, %v1242_v22 }
 0x259   :  { %v2271_v26 = vpop.eup %2270  ;;  %v1247_v28 = vsel %vm1245_vm9, %v1246_v24, %v1244_v25 }
 0x25a   :  { %2272 = vrsqrt.f32 %v1247_v28  ;;  %v1249_v29 = vmul.f32 %v2271_v26, %v1228_v16 }
 0x25b   :  { %2274 = vrsqrt.f32 %v1240_v27  ;;  %v1761_v27 = vld [vmem:[%s2927_s21] sm:$0xff] }
 0x25c   :  { %v1251_v31 = vsel %vm1250_vm10, %v1228_v16, %v1249_v29 }
 0x25d   :  { %v1254_v32 = vsel %vm1252_vm11, %v1253_v30, %v1251_v31 }
 0x25e   :  { %2276 = vrsqrt.f32 %v1254_v32 }
 0x267   :  { %v2273_v33 = vpop.eup %2272 }
 0x268   :  { %v2275_v34 = vpop.eup %2274  ;;  %v1259_v35 = vmul.f32 %v2273_v33, %v2269_v20  ;;  %v1679_v20 = vld [vmem:[#allocation13] sm:$0xff]  ;;  %v1842_v33 = vld [vmem:[#allocation14] sm:$0xff] }
 0x269   :  { %v1258_v38 = vmul.f32 %v2275_v34, %v2267_v18  ;;  %v1847_v34 = vpop.permute.xlu1 %1846 }
 0x26a   :  { %v1262_v40 = vmul.f32 %v1259_v35, %v2825_v63 }
 0x26b   :  { %v2277_v36 = vpop.eup %2276  ;;  %v1261_v42 = vmul.f32 %v1258_v38, %v2829_v2  ;;  %v1440_v2 = vpop.permute.xlu0 %1439 }
 0x26c   :  { %v1260_v37 = vmul.f32 %v2277_v36, %v2271_v26  ;;  %v1265_v43 = vmax.f32 %v1262_v40, 0.0 }
 0x26d   :  { %v1264_v44 = vmax.f32 %v1261_v42, 0.0  ;;  %v1935_v40 = vpop.permute.xlu1 %1934 }
 0x26e   :  { %v1263_v39 = vmul.f32 %v1260_v37, %v2827_v1  ;;  %v1435_v1 = vld [vmem:[%s2919_s13] sm:$0xff] }
 0x26f   :  { %v1603_v15 = vpop.permute.xlu0 %1602 }
 0x270   :  { %v1266_v41 = vmax.f32 %v1263_v39, 0.0  ;;  %v1924_v39 = vld [vmem:[%s2931_s25 + $0x8] sm:$0x3] }
 0x272   :  { %2196 = vmatpush3.msra.mxu1 %v1266_v41 }
 0x273   :  { %2197 = vmatprep.subr.mxu1 %v2486_v0  ;;  %v1766_v28 = vpop.permute.xlu0 %1765 }
 0x274   :  { %2198 = vmatpush3.msra.mxu1 %v1265_v43 }
 0x275   :  { %2199 = vmatprep.subr.mxu1 %v2486_v0 }
 0x276   :  { %2200 = vmatpush3.msra.mxu1 %v1264_v44 }
 0x277   :  { %2202 = vmatmul.mubr.msk.f32.vlgmr.msra.gmra.mxu1 %vm1141_vm5, %v1267_v45  ;;  %2204 = vmatprep.subr.mxu1 %v2486_v0  ;;  %v1930_v43 = vpop.permute.xlu0 %1929 }
 0x278   :  { %2206 = vmatprep.mubr.msk.f32.mxu1 %vm2487_vm0, %v2486_v0 }
 0x337   :  { %v1343_v47 = vpop.f32.mrf.mxu1 }
 0x338   :  { %v1344_v48 = vadd.f32 %v1343_v47, %v1272_v46 }
 0x339   :  { %v2203_v49 = vpop.f32.mrf.mxu1 }
 0x33a   :  { %v1348_v50 = vmul.f32 %v1344_v48, %v1344_v48 }
 0x33c   :  { %2205 = vmatpush3.msra.mxu1 %v1348_v50 }
 0x33d   :  { %2207 = vmatmul.mubr.msk.f32.vlgmr.msra.gmra.mxu1 %vm1349_vm12, %v1347_v51  ;;  %2209 = vmatprep.subr.mxu1 %v2486_v0 }
 0x33e   :  { %2211 = vmatprep.mubr.msk.f32.mxu1 %vm2487_vm0, %v2486_v0 }
 0x3fd   :  { %v1419_v52 = vpop.f32.mrf.mxu1 }
 0x3fe   :  { %v1420_v53 = vadd.f32 1.0, %v1419_v52 }
 0x3ff   :  { %v2208_v54 = vpop.f32.mrf.mxu1 }
 0x400   :  { %2278 = vrsqrt.f32 %v1420_v53  ;;  %vm1426_vm13 = vcmp.eq.f32.partialorder %v1420_v53, inf  ;;  %v1429_v57 = vand.u32 2147483648, %v1420_v53  ;;  %vm1428_vm14 = vcmp.eq.f32.partialorder %v1420_v53, 0.0 }
 0x40d   :  { %v2279_v55 = vpop.eup %2278 }
 0x40e   :  { %v1425_v56 = vmul.f32 %v2279_v55, %v1420_v53 }
 0x410   :  { %v1427_v58 = vsel %vm1426_vm13, %v1420_v53, %v1425_v56 }
 0x411   :  { %v1430_v59 = vsel %vm1428_vm14, %v1429_v57, %v1427_v58 }
 0x412   :  { %2280 = vrsqrt.f32 %v1430_v59 }
 0x41f   :  { %v2281_v60 = vpop.eup %2280 }
 0x420   :  { %v1432_v61 = vmul.f32 %v2281_v60, %v2279_v55 }
 0x422   :  { %v1433_v62 = vmul.f32 %v1432_v61, %v1344_v48 }
 0x424   :  { %v1434_v63 = vmax.f32 %v1433_v62, 0.0 }
 0x426   :  { %2210 = vmatpush3.msra.mxu1 %v1434_v63 }
 0x427   :  { %2212 = vmatmul.mubr.msk.f32.vlgmr.msra.gmra.mxu1 %vm1349_vm12, %v1435_v1  ;;  %2219 = vmatprep.subr.mxu1 %v2486_v0 }
 0x428   :  { %2221 = vmatprep.mubr.msk.f32.mxu1 %vm2487_vm0, %v2486_v0 }
 0x4e7   :  { %v1511_v3 = vpop.f32.mrf.mxu1 }
 0x4e8   :  { %v1512_v4 = vadd.f32 %v1511_v3, %v1440_v2 }
 0x4e9   :  { %v2213_v5 = vpop.f32.mrf.mxu1 }
 0x4ea   :  { %v1515_v6 = vmax.f32 %v1512_v4, 0.0 }
 0x4ec   :  { %2215 = vmatpush3.msra.mxu0 %v1515_v6 }
 0x4ed   :  { %2217 = vmatmul.mubr.msk.f32.vlgmr.msra.gmra.mxu0 %vm1349_vm12, %v1516_v7  ;;  %2224 = vmatprep.subr.mxu0 %v2486_v0 }
 0x4ee   :  { %2226 = vmatprep.mubr.msk.f32.mxu0 %vm2487_vm0, %v2486_v0 }
 0x5ad   :  { %v1592_v9 = vpop.f32.mrf.mxu0 }
 0x5ae   :  { %v1593_v10 = vadd.f32 %v1592_v9, %v1521_v8 }
 0x5af   :  { %v2218_v11 = vpop.f32.mrf.mxu0 }
 0x5b0   :  { %v1596_v12 = vadd.f32 %v1593_v10, %v1434_v63 }
 0x5b2   :  { %v1597_v13 = vmax.f32 %v1596_v12, 0.0 }
 0x5b4   :  { %2220 = vmatpush3.msra.mxu1 %v1597_v13 }
 0x5b5   :  { %2222 = vmatmul.mubr.msk.f32.vlgmr.msra.gmra.mxu1 %vm1349_vm12, %v1598_v14  ;;  %2229 = vmatprep.subr.mxu1 %v2486_v0 }
 0x5b6   :  { %2231 = vmatprep.mubr.msk.f32.mxu1 %vm2487_vm0, %v2486_v0 }
 0x675   :  { %v1674_v16 = vpop.f32.mrf.mxu1 }
 0x676   :  { %v1675_v17 = vadd.f32 %v1674_v16, %v1603_v15 }
 0x677   :  { %v2223_v18 = vpop.f32.mrf.mxu1 }
 0x678   :  { %v1678_v19 = vmax.f32 %v1675_v17, 0.0 }
 0x67a   :  { %2225 = vmatpush3.msra.mxu0 %v1678_v19 }
 0x67b   :  { %2227 = vmatmul.mubr.msk.f32.vlgmr.msra.gmra.mxu0 %vm1349_vm12, %v1679_v20  ;;  %2234 = vmatprep.subr.mxu0 %v2486_v0 }
 0x67c   :  { %2236 = vmatprep.mubr.msk.f32.mxu0 %vm2487_vm0, %v2486_v0  ;;  %v1923_v0 = vld [vmem:[%s2931_s25] sm:$0xff] }
 0x73b   :  { %v1755_v22 = vpop.f32.mrf.mxu0 }
 0x73c   :  { %v1756_v23 = vadd.f32 %v1755_v22, %v1684_v21 }
 0x73d   :  { %v2228_v24 = vpop.f32.mrf.mxu0 }
 0x73e   :  { %v1759_v25 = vadd.f32 %v1756_v23, %v1597_v13 }
 0x740   :  { %v1760_v26 = vmax.f32 %v1759_v25, 0.0 }
 0x742   :  { %2230 = vmatpush3.msra.mxu1 %v1760_v26 }
 0x743   :  { %2232 = vmatmul.mubr.msk.f32.vlgmr.msra.gmra.mxu1 %vm1349_vm12, %v1761_v27 }
 0x744   :  { %2241 = vmatprep.mubr.msk.f32.mxu1 %vm1349_vm12, %v1923_v0 }
 0x803   :  { %v1837_v29 = vpop.f32.mrf.mxu1 }
 0x804   :  { %v1838_v30 = vadd.f32 %v1837_v29, %v1766_v28 }
 0x805   :  { %v2233_v31 = vpop.f32.mrf.mxu1 }
 0x806   :  { %v1841_v32 = vmax.f32 %v1838_v30, 0.0 }
 0x808   :  { %2235 = vmatpush3.msra.mxu0 %v1841_v32 }
 0x809   :  { %2237 = vmatmul.mubr.msk.f32.vlgmr.msra.gmra.mxu0 %vm1349_vm12, %v1842_v33 }
 0x8c9   :  { %v1918_v35 = vpop.f32.mrf.mxu0 }
 0x8ca   :  { %v1919_v36 = vadd.f32 %v1918_v35, %v1847_v34 }
 0x8cb   :  { %v2238_v37 = vpop.f32.mrf.mxu0 }
 0x8cc   :  { %v1922_v38 = vmax.f32 %v1919_v36, 0.0 }
 0x8ce   :  { %2239 = vmatprep.subr.mxu1 %v1922_v38 }
 0x8cf   :  { %2240 = vmatpush3.msra.mxu1 %v1922_v38 }
 0x8d0   :  { %2242 = vmatmul.mubr.msk.f32.vlgmr.msra.gmra.mxu1 %vm1349_vm12, %v1924_v39 }
 0x990   :  { %v2243_v41 = vpop.f32.mrf.mxu1 }
 0x991   :  { %v2015_v42 = vadd.f32 %v2243_v41, %v1935_v40 }
 0x992   :  { %v2009_v44 = vpop.f32.mrf.mxu1 }
 0x993   :  { %2019 = vst [vmem:[#allocation16 + $0x8] sm:$0x3] %v2015_v42  ;;  %v2010_v45 = vadd.f32 %v2009_v44, %v1930_v43 }
 0x995   :  { %2018 = vst [vmem:[#allocation16] sm:$0xff] %v2010_v45 }
 0x996   :  { %2453 = shalt.err (!%p2450_p2)
}
 0x997   :  { %s2961_s25 = smov 128  }
 0x998   :  { %2031 = dma.vmem_to_hbm [thread:$0]  %s2026_s12, 256, %s2933_s27, [#allocation4], %s2961_s25, %s2961_s25, %s2477_s1  }
 0x999   :  { %2472 = dma.done.wait [#allocation4], 256  }
 0x99a   :  { %2473 = vsyncadd [#allocation4], 4294967040 }
 0x99b   :  { %2035 = vsyncpa [#allocation3], 1 }
 0x99c   :  { %2036 = vsyncpa [#allocation6], 1 }
 0x99d   :  { %2037 = vsyncpa [#allocation9], 1 }
 0x99e   :  { %2038 = vsyncpa [#allocation12], 1 }
 0x99f   :  { %2039 = vsyncpa [#allocation15], 1 }
 0x9a0   :  { %2040 = vsyncpa [#allocation4], 1 }

</bundles_post_ra>
